<compile_context>
chip_gen: v7x
topology: tpu7x:2x2x1
jax: 0.10.0
libtpu: 0.0.40
codegen_flags: <defaults>
</compile_context>

<pallas_src>
import math

import jax
import jax.numpy as jnp
from jax.experimental import pallas as pl
from jax.experimental.pallas import tpu as pltpu


def _round_up(x, m):
    return ((x + m - 1) // m) * m


def _dcritic_kernel(taus_ref, state_ref, pis_ref,
                    wc_ref, bc_ref, ws_ref, bsb_ref,
                    w2_ref, b2_ref, w3_ref, b3_ref,
                    out_ref):
    # cosine features cos(tau_n * pi_c): (C, TN), f32 on the EUP
    cos = jnp.cos(pis_ref[...] * taus_ref[...])

    # cosine embedding (no activation, matching the reference module): (H, TN)
    # bf16 MXU operands, f32 accumulation, f32 bias add.
    cos_embd = jnp.dot(wc_ref[...], cos.astype(jnp.bfloat16),
                       preferred_element_type=jnp.float32) + bc_ref[...]

    # state embedding on the pre-repeated state (S, TN) -> (H, TN)
    state_embd = jnp.dot(ws_ref[...], state_ref[...].astype(jnp.bfloat16),
                         preferred_element_type=jnp.float32) + bsb_ref[...]

    # Hadamard combine in f32 (keep elementwise path f32 for v5e's VPU)
    comb = state_embd * cos_embd                                   # (H, TN)

    # fc2 + ReLU: (H, TN)
    x = jnp.maximum(
        jnp.dot(w2_ref[...], comb.astype(jnp.bfloat16),
                preferred_element_type=jnp.float32) + b2_ref[...], 0.0)

    # fc3: (1, H) @ (H, TN) -> (1, TN), lane-dense unmasked store
    out_ref[...] = jnp.dot(w3_ref[...], x.astype(jnp.bfloat16),
                           preferred_element_type=jnp.float32) + b3_ref[...]


def dcritic_forward(params, state, taus, *, tile_n=1024):
    """Returns (quantiles (bs, n_taus, 1), taus (bs, n_taus)), like DCritic.forward."""
    bs, n_taus = taus.shape
    s_dim = state.shape[1]
    h = params['w2T'].shape[0]
    c = params['pis'].shape[0]
    n = bs * n_taus

    # Lane-dense layout: BS*T on the last (lane) axis.
    taus_row = taus.reshape(1, n).astype(jnp.float32)                       # (1, N)
    # Pre-repeated state replaces the O(BS^2*T) one-hot broadcast matmul.
    state_rep = jnp.repeat(state.T.astype(jnp.float32), n_taus, axis=1)     # (S, N)

    tn = min(tile_n, _round_up(n, 128))        # lane tile, multiple of 128
    n_pad = _round_up(n, tn)
    if n_pad != n:
        taus_row = jnp.pad(taus_row, ((0, 0), (0, n_pad - n)))
        state_rep = jnp.pad(state_rep, ((0, 0), (0, n_pad - n)))
    grid = (n_pad // tn,)

    def lane(rows):      # tiled along the lane axis, pipelined per grid step
        return pl.BlockSpec((rows, tn), lambda i: (0, i))

    def resident(shape):  # constant index_map: DMA'd once, stays VMEM-resident
        return pl.BlockSpec(shape, lambda i: (0, 0))

    cost = pl.CostEstimate(
        flops=2 * n_pad * (h * c + h * s_dim + h * h + h),
        transcendentals=c * n_pad,
        bytes_accessed=(2 * (h * c + h * s_dim + h * h + h)    # bf16 weights
                        + 4 * (3 * h + 1 + c)                  # f32 biases + pis
                        + 4 * n_pad * (1 + s_dim + 1)))        # taus + state in, out

    out = pl.pallas_call(
        _dcritic_kernel,
        out_shape=jax.ShapeDtypeStruct((1, n_pad), jnp.float32),
        grid_spec=pltpu.PrefetchScalarGridSpec(
            num_scalar_prefetch=0,
            grid=grid,
            in_specs=[
                lane(1),                      # taus           (1, N)
                lane(s_dim),                  # repeated state (S, N)
                resident((c, 1)),             # pis
                resident((h, c)),             # wcT (bf16)
                resident((h, 1)),             # bc  (f32)
                resident((h, s_dim)),         # wsT (bf16)
                resident((h, 1)),             # bs  (f32)
                resident((h, h)),             # w2T (bf16)
                resident((h, 1)),             # b2  (f32)
                resident((1, h)),             # w3  (bf16)
                resident((1, 1)),             # b3  (f32)
            ],
            out_specs=lane(1),
        ),
        compiler_params=pltpu.CompilerParams(
            dimension_semantics=("parallel",)),   # shard lane axis across TCs (v7x)
        cost_estimate=cost,
    )(taus_row, state_rep, params['pis'],
      params['wcT'], params['bc'], params['wsT'], params['bs'],
      params['w2T'], params['b2'], params['w3'], params['b3'])

    return out[:, :n].reshape(bs, n_taus, 1), taus


def init_params(key, state_size, hidden_size=32, n_cosines=64):
    """Deterministic init mimicking torch.nn.Linear defaults, stored in the
    kernel's transposed (out, in) layout; bf16 MXU weights, f32 biases."""
    def linear_t(k, fan_in, fan_out):
        bound = 1.0 / math.sqrt(fan_in)
        kw, kb = jax.random.split(k)
        w_t = jax.random.uniform(kw, (fan_out, fan_in), jnp.float32, -bound, bound)
        b_c = jax.random.uniform(kb, (fan_out, 1), jnp.float32, -bound, bound)
        return w_t.astype(jnp.bfloat16), b_c

    k1, k2, k3, k4 = jax.random.split(key, 4)
    wcT, bc = linear_t(k1, n_cosines, hidden_size)     # cosine_embedding_layer
    wsT, bsb = linear_t(k2, state_size, hidden_size)   # state_embedding_layer
    w2T, b2 = linear_t(k3, hidden_size, hidden_size)   # fc2
    w3, b3 = linear_t(k4, hidden_size, 1)              # fc3: (1, H), (1, 1)
    pis = (jnp.pi * jnp.arange(1, n_cosines + 1, dtype=jnp.float32)
           ).reshape(n_cosines, 1)                     # (C, 1) column, f32
    return dict(pis=pis, wcT=wcT, bc=bc, wsT=wsT, bs=bsb,
                w2T=w2T, b2=b2, w3=w3, b3=b3)


if __name__ == "__main__":
    key = jax.random.PRNGKey(0)
    state_size, hidden, n_cos = 4, 32, 64
    bs, n_taus, lb, ub = 2, 64, 0.0, 1.0

    pkey, skey, tkey = jax.random.split(key, 3)
    params = init_params(pkey, state_size, hidden, n_cos)
    state = jax.random.normal(skey, (bs, state_size), jnp.float32)
    # matches torch's `uniform_(lb, 1) * ub` tau sampling (done in glue, not in-kernel)
    taus = jax.random.uniform(tkey, (bs, n_taus), jnp.float32, lb, 1.0) * ub

    q, taus_out = dcritic_forward(params, state, taus)
    q = jax.block_until_ready(q)

    # pure-JAX reference mirroring the kernel's bf16-operand / f32-accumulate math
    f32, bf16 = jnp.float32, jnp.bfloat16
    pis_vec = params['pis'][:, 0]                                    # (C,)
    cos = jnp.cos(taus[:, :, None] * pis_vec)                        # (bs, T, C) f32
    cos_embd = (jnp.dot(cos.reshape(bs * n_taus, n_cos).astype(bf16),
                        params['wcT'].T, preferred_element_type=f32)
                + params['bc'][:, 0])
    state_embd = (jnp.dot(state.astype(bf16), params['wsT'].T,
                          preferred_element_type=f32) + params['bs'][:, 0])
    comb = (state_embd[:, None, :] *
            cos_embd.reshape(bs, n_taus, hidden)).reshape(bs * n_taus, hidden)
    x = jnp.maximum(jnp.dot(comb.astype(bf16), params['w2T'].T,
                            preferred_element_type=f32) + params['b2'][:, 0], 0.0)
    q_ref = (jnp.dot(x.astype(bf16), params['w3'].T,
                     preferred_element_type=f32) + params['b3'][:, 0]
             ).reshape(bs, n_taus, 1)

    assert q.shape == (bs, n_taus, 1) and taus_out.shape == (bs, n_taus)
    assert jnp.allclose(q, q_ref, atol=2e-2, rtol=2e-2), \
        float(jnp.max(jnp.abs(q - q_ref)))
    print("KERNEL_OK")
</pallas_src>

<mosaic_0001>
module attributes {stable_mosaic.version = 11 : i64} {
  func.func @_dcritic_kernel(%arg0: i32, %arg1: memref<1x128xf32, #tpu.memory_space<vmem>>, %arg2: memref<4x128xf32, #tpu.memory_space<vmem>>, %arg3: memref<64x1xf32, #tpu.memory_space<vmem>>, %arg4: memref<32x64xbf16, #tpu.memory_space<vmem>>, %arg5: memref<32x1xf32, #tpu.memory_space<vmem>>, %arg6: memref<32x4xbf16, #tpu.memory_space<vmem>>, %arg7: memref<32x1xf32, #tpu.memory_space<vmem>>, %arg8: memref<32x32xbf16, #tpu.memory_space<vmem>>, %arg9: memref<32x1xf32, #tpu.memory_space<vmem>>, %arg10: memref<1x32xbf16, #tpu.memory_space<vmem>>, %arg11: memref<1x1xf32, #tpu.memory_space<vmem>>, %arg12: memref<1x128xf32, #tpu.memory_space<vmem>>) attributes {dimension_semantics = [#tpu.dimension_semantics<parallel>], iteration_bounds = array<i64: 1>, scalar_prefetch = 0 : i64, scratch_operands = 0 : i64, tpu.core_type = #tpu.core_type<tc>, window_params = [{transform_indices = @transform_0, window_bounds = array<i64: 1, 128>}, {transform_indices = @transform_1, window_bounds = array<i64: 4, 128>}, {pipeline_mode = #tpu.pipeline_mode<synchronous>, transform_indices = @transform_2, window_bounds = array<i64: 64, 1>}, {pipeline_mode = #tpu.pipeline_mode<synchronous>, transform_indices = @transform_3, window_bounds = array<i64: 32, 64>}, {pipeline_mode = #tpu.pipeline_mode<synchronous>, transform_indices = @transform_4, window_bounds = array<i64: 32, 1>}, {pipeline_mode = #tpu.pipeline_mode<synchronous>, transform_indices = @transform_5, window_bounds = array<i64: 32, 4>}, {pipeline_mode = #tpu.pipeline_mode<synchronous>, transform_indices = @transform_6, window_bounds = array<i64: 32, 1>}, {pipeline_mode = #tpu.pipeline_mode<synchronous>, transform_indices = @transform_7, window_bounds = array<i64: 32, 32>}, {pipeline_mode = #tpu.pipeline_mode<synchronous>, transform_indices = @transform_8, window_bounds = array<i64: 32, 1>}, {pipeline_mode = #tpu.pipeline_mode<synchronous>, transform_indices = @transform_9, window_bounds = array<i64: 1, 32>}, {pipeline_mode = #tpu.pipeline_mode<synchronous>, transform_indices = @transform_10, window_bounds = array<i64: 1, 1>}, {transform_indices = @transform_11, window_bounds = array<i64: 1, 128>}]} {
    %c0 = arith.constant 0 : index
    %c0_0 = arith.constant 0 : index
    %0 = vector.load %arg3[%c0, %c0_0] : memref<64x1xf32, #tpu.memory_space<vmem>>, vector<64x1xf32>
    %c0_1 = arith.constant 0 : index
    %c0_2 = arith.constant 0 : index
    %1 = vector.load %arg1[%c0_1, %c0_2] : memref<1x128xf32, #tpu.memory_space<vmem>>, vector<1x128xf32>
    %2 = vector.broadcast %0 : vector<64x1xf32> to vector<64x128xf32>
    %3 = vector.broadcast %1 : vector<1x128xf32> to vector<64x128xf32>
    %4 = arith.mulf %2, %3 : vector<64x128xf32>
    %5 = math.cos %4 : vector<64x128xf32>
    %c0_3 = arith.constant 0 : index
    %c0_4 = arith.constant 0 : index
    %6 = vector.load %arg4[%c0_3, %c0_4] : memref<32x64xbf16, #tpu.memory_space<vmem>>, vector<32x64xbf16>
    %7 = arith.truncf %5 : vector<64x128xf32> to vector<64x128xbf16>
    %cst = arith.constant dense<0.000000e+00> : vector<32x128xf32>
    %8 = tpu.matmul %6, %7, %cst {dimension_numbers = #tpu.dot_dimension_numbers<[1], [0], [0], [1], [0, 0, 1, 1], [], []>} : vector<32x64xbf16>, vector<64x128xbf16>, vector<32x128xf32> -> vector<32x128xf32>
    %c0_5 = arith.constant 0 : index
    %c0_6 = arith.constant 0 : index
    %9 = vector.load %arg5[%c0_5, %c0_6] : memref<32x1xf32, #tpu.memory_space<vmem>>, vector<32x1xf32>
    %10 = vector.broadcast %9 : vector<32x1xf32> to vector<32x128xf32>
    %11 = arith.addf %8, %10 : vector<32x128xf32>
    %c0_7 = arith.constant 0 : index
    %c0_8 = arith.constant 0 : index
    %12 = vector.load %arg6[%c0_7, %c0_8] : memref<32x4xbf16, #tpu.memory_space<vmem>>, vector<32x4xbf16>
    %c0_9 = arith.constant 0 : index
    %c0_10 = arith.constant 0 : index
    %13 = vector.load %arg2[%c0_9, %c0_10] : memref<4x128xf32, #tpu.memory_space<vmem>>, vector<4x128xf32>
    %14 = arith.truncf %13 : vector<4x128xf32> to vector<4x128xbf16>
    %cst_11 = arith.constant dense<0.000000e+00> : vector<32x128xf32>
    %15 = tpu.matmul %12, %14, %cst_11 {dimension_numbers = #tpu.dot_dimension_numbers<[1], [0], [0], [1], [0, 0, 1, 1], [], []>} : vector<32x4xbf16>, vector<4x128xbf16>, vector<32x128xf32> -> vector<32x128xf32>
    %c0_12 = arith.constant 0 : index
    %c0_13 = arith.constant 0 : index
    %16 = vector.load %arg7[%c0_12, %c0_13] : memref<32x1xf32, #tpu.memory_space<vmem>>, vector<32x1xf32>
    %17 = vector.broadcast %16 : vector<32x1xf32> to vector<32x128xf32>
    %18 = arith.addf %15, %17 : vector<32x128xf32>
    %19 = arith.mulf %18, %11 : vector<32x128xf32>
    %c0_14 = arith.constant 0 : index
    %c0_15 = arith.constant 0 : index
    %20 = vector.load %arg8[%c0_14, %c0_15] : memref<32x32xbf16, #tpu.memory_space<vmem>>, vector<32x32xbf16>
    %21 = arith.truncf %19 : vector<32x128xf32> to vector<32x128xbf16>
    %cst_16 = arith.constant dense<0.000000e+00> : vector<32x128xf32>
    %22 = tpu.matmul %20, %21, %cst_16 {dimension_numbers = #tpu.dot_dimension_numbers<[1], [0], [0], [1], [0, 0, 1, 1], [], []>} : vector<32x32xbf16>, vector<32x128xbf16>, vector<32x128xf32> -> vector<32x128xf32>
    %c0_17 = arith.constant 0 : index
    %c0_18 = arith.constant 0 : index
    %23 = vector.load %arg9[%c0_17, %c0_18] : memref<32x1xf32, #tpu.memory_space<vmem>>, vector<32x1xf32>
    %24 = vector.broadcast %23 : vector<32x1xf32> to vector<32x128xf32>
    %25 = arith.addf %22, %24 : vector<32x128xf32>
    %cst_19 = arith.constant 0.000000e+00 : f32
    %26 = vector.broadcast %cst_19 : f32 to vector<32x128xf32>
    %27 = arith.maximumf %25, %26 : vector<32x128xf32>
    %c0_20 = arith.constant 0 : index
    %c0_21 = arith.constant 0 : index
    %28 = vector.load %arg10[%c0_20, %c0_21] : memref<1x32xbf16, #tpu.memory_space<vmem>>, vector<1x32xbf16>
    %29 = arith.truncf %27 : vector<32x128xf32> to vector<32x128xbf16>
    %cst_22 = arith.constant dense<0.000000e+00> : vector<1x128xf32>
    %30 = tpu.matmul %28, %29, %cst_22 {dimension_numbers = #tpu.dot_dimension_numbers<[1], [0], [0], [1], [0, 0, 1, 1], [], []>} : vector<1x32xbf16>, vector<32x128xbf16>, vector<1x128xf32> -> vector<1x128xf32>
    %c0_23 = arith.constant 0 : index
    %c0_24 = arith.constant 0 : index
    %31 = vector.load %arg11[%c0_23, %c0_24] : memref<1x1xf32, #tpu.memory_space<vmem>>, vector<1x1xf32>
    %32 = vector.broadcast %31 : vector<1x1xf32> to vector<1x128xf32>
    %33 = arith.addf %30, %32 : vector<1x128xf32>
    %c0_25 = arith.constant 0 : index
    %c0_26 = arith.constant 0 : index
    %34 = vector.load %arg12[%c0_25, %c0_26] : memref<1x128xf32, #tpu.memory_space<vmem>>, vector<1x128xf32>
    tpu.vector_store %arg12[%c0_25, %c0_26], %33 {strides = array<i32>} : memref<1x128xf32, #tpu.memory_space<vmem>>, vector<1x128xf32>,
    return
  }
  func.func @transform_0(%arg0: i32) -> (i32, i32) {
    %c0_i32 = arith.constant 0 : i32
    %c0_i32_0 = arith.constant 0 : i32
    return %c0_i32, %arg0 : i32, i32
  }
  func.func @transform_1(%arg0: i32) -> (i32, i32) {
    %c0_i32 = arith.constant 0 : i32
    %c0_i32_0 = arith.constant 0 : i32
    return %c0_i32, %arg0 : i32, i32
  }
  func.func @transform_2(%arg0: i32) -> (i32, i32) {
    %c0_i32 = arith.constant 0 : i32
    %c0_i32_0 = arith.constant 0 : i32
    %c0_i32_1 = arith.constant 0 : i32
    return %c0_i32, %c0_i32_0 : i32, i32
  }
  func.func @transform_3(%arg0: i32) -> (i32, i32) {
    %c0_i32 = arith.constant 0 : i32
    %c0_i32_0 = arith.constant 0 : i32
    %c0_i32_1 = arith.constant 0 : i32
    return %c0_i32, %c0_i32_0 : i32, i32
  }
  func.func @transform_4(%arg0: i32) -> (i32, i32) {
    %c0_i32 = arith.constant 0 : i32
    %c0_i32_0 = arith.constant 0 : i32
    %c0_i32_1 = arith.constant 0 : i32
    return %c0_i32, %c0_i32_0 : i32, i32
  }
  func.func @transform_5(%arg0: i32) -> (i32, i32) {
    %c0_i32 = arith.constant 0 : i32
    %c0_i32_0 = arith.constant 0 : i32
    %c0_i32_1 = arith.constant 0 : i32
    return %c0_i32, %c0_i32_0 : i32, i32
  }
  func.func @transform_6(%arg0: i32) -> (i32, i32) {
    %c0_i32 = arith.constant 0 : i32
    %c0_i32_0 = arith.constant 0 : i32
    %c0_i32_1 = arith.constant 0 : i32
    return %c0_i32, %c0_i32_0 : i32, i32
  }
  func.func @transform_7(%arg0: i32) -> (i32, i32) {
    %c0_i32 = arith.constant 0 : i32
    %c0_i32_0 = arith.constant 0 : i32
    %c0_i32_1 = arith.constant 0 : i32
    return %c0_i32, %c0_i32_0 : i32, i32
  }
  func.func @transform_8(%arg0: i32) -> (i32, i32) {
    %c0_i32 = arith.constant 0 : i32
    %c0_i32_0 = arith.constant 0 : i32
    %c0_i32_1 = arith.constant 0 : i32
    return %c0_i32, %c0_i32_0 : i32, i32
  }
  func.func @transform_9(%arg0: i32) -> (i32, i32) {
    %c0_i32 = arith.constant 0 : i32
    %c0_i32_0 = arith.constant 0 : i32
    %c0_i32_1 = arith.constant 0 : i32
    return %c0_i32, %c0_i32_0 : i32, i32
  }
  func.func @transform_10(%arg0: i32) -> (i32, i32) {
    %c0_i32 = arith.constant 0 : i32
    %c0_i32_0 = arith.constant 0 : i32
    %c0_i32_1 = arith.constant 0 : i32
    return %c0_i32, %c0_i32_0 : i32, i32
  }
  func.func @transform_11(%arg0: i32) -> (i32, i32) {
    %c0_i32 = arith.constant 0 : i32
    %c0_i32_0 = arith.constant 0 : i32
    return %c0_i32, %arg0 : i32, i32
  }
}

</mosaic_0001>

<bundles_post_ra>
// kernel: tpu_custom_call.1
= control target key start
LH: loop header
LB: loop body
LE: loop exit
PB: predicated region body
PF: predicated region fallthrough
CT: control target
= control target key end

     0   :  { %s2397_s0 = inlined_call_operand.vmem [shape: f32[1,128], index: 0, kind: input, shape index: {}]   ;;  %s2398_s1 = inlined_call_operand.vmem [shape: f32[4,128], index: 1, kind: input, shape index: {}]   ;;  %s2399_s2 = inlined_call_operand.vmem [shape: f32[64,1], index: 2, kind: input, shape index: {}]   ;;  %s2400_s3 = inlined_call_operand.vmem [shape: bf16[32,64], index: 3, kind: input, shape index: {}]   ;;  %s2401_s4 = inlined_call_operand.vmem [shape: f32[32,1], index: 4, kind: input, shape index: {}]   ;;  %s2402_s5 = inlined_call_operand.vmem [shape: bf16[32,4], index: 5, kind: input, shape index: {}]   ;;  %s2403_s6 = inlined_call_operand.vmem [shape: f32[32,1], index: 6, kind: input, shape index: {}]   ;;  %s2404_s7 = inlined_call_operand.vmem [shape: bf16[32,32], index: 7, kind: input, shape index: {}]   ;;  %s2405_s8 = inlined_call_operand.vmem [shape: f32[32,1], index: 8, kind: input, shape index: {}]   ;;  %s2406_s9 = inlined_call_operand.vmem [shape: bf16[1,32], index: 9, kind: input, shape index: {}]   ;;  %s2407_s10 = inlined_call_operand.<no memory space> [shape: f32[1,1], index: 10, kind: input, shape index: {}]   ;;  %s2408_s11 = inlined_call_operand.hbm [shape: f32[1,128], index: 11, kind: output, shape index: {}]  }
   0x1   :  { %v16_v0 = vstv %s2407_s10 }
   0x2   :  { %17 = vst [vmem:[#allocation2] sm:$0x1] %v16_v0 }
   0x3   :  { %v44_v1 = vld [vmem:[%s2399_s2 + $0x10] sm:$0xff]  ;;  %v42_v2 = vld [vmem:[%s2399_s2] sm:$0xff]  ;;  %vm1074_vm0 = vcmask 1041408   ;;  %v1505_v4 = vmov 0   ;;  %vm1067_vm1 = vcmask 31744   ;;  %v45_v7 = vld [vmem:[%s2399_s2 + $0x18] sm:$0xff] }
   0x4   :  { %v1031_v3 = vld [vmem:[%s2398_s1] sm:$0xf]  ;;  %1442 = vset.pattern.permute.xlu1 %v1505_v4  ;;  %1441 = vset.pattern.permute.xlu0 %v1505_v4  ;;  %v43_v9 = vld [vmem:[%s2399_s2 + $0x8] sm:$0xff]  ;;  %v49_v13 = vld [vmem:[%s2399_s2 + $0x38] sm:$0xff] }
   0x5   :  { %v1032_v5 = vpack.c.bf16 %v1031_v3, %v1031_v3  ;;  %v1443_v6 = vld [vmem:[%s2402_s5] sm:$0xff]   ;;  %63 = vperm.xlu1 %1442, %v44_v1   ;;  %53 = vperm.xlu0 %1441, %v42_v2   ;;  %v1444_v10 = vld [vmem:[%s2402_s5 + $0x8] sm:$0xff]   ;;  %v48_v14 = vld [vmem:[%s2399_s2 + $0x30] sm:$0xff] }
   0x6   :  { %1378 = vmatprep.mubr.msk.bf16.mxu1 %vm1067_vm1, %v1443_v6  ;;  %v47_v11 = vld [vmem:[%s2399_s2 + $0x28] sm:$0xff]  ;;  %v46_v12 = vld [vmem:[%s2399_s2 + $0x20] sm:$0xff] }
   0x7   :  { %1398 = vmatprep.subr.msk.bf16.mxu1 %vm1074_vm0, %v1032_v5  ;;  %v1076_v8 = vsel %vm1074_vm0, %v1032_v5, 0 }
   0x8   :  { %1377 = vmatpush3.bf16.msra.mxu1 %v1076_v8 }
   0x9   :  { %68 = vperm.xlu1 %1442, %v45_v7   ;;  %58 = vperm.xlu0 %1441, %v43_v9  }
   0xb   :  { %1379 = vmatmul.mubr.msk.bf16.vlgmr.msra.gmra.mrb[0].mxu1 %vm1067_vm1, %v1444_v10 }
   0xd   :  { %78 = vperm.xlu1 %1442, %v47_v11   ;;  %73 = vperm.xlu0 %1441, %v46_v12  }
   0xe   :  { %18 = vsyncpa [#allocation4], 0  ;;  %v938_v15 = vld [vmem:[%s2401_s4 + $0x8] sm:$0xff]  ;;  %v937_v16 = vld [vmem:[%s2401_s4] sm:$0xff]  ;;  %v1506_v2 = vmov 683565275  }
   0xf   :  { %v1034_v17 = vld [vmem:[%s2403_s6 + $0x8] sm:$0xff]  ;;  %v1033_v18 = vld [vmem:[%s2403_s6] sm:$0xff]  ;;  %v940_v19 = vld [vmem:[%s2401_s4 + $0x18] sm:$0xff]  ;;  %v1507_v4 = vmov 2475754826   ;;  %s1514_s25 = smov [#allocation3]  }
  0x10   :  { %v939_v20 = vld [vmem:[%s2401_s4 + $0x10] sm:$0xff]  ;;  %v1036_v21 = vld [vmem:[%s2403_s6 + $0x18] sm:$0xff]  ;;  %v1138_v23 = vld [vmem:[%s2405_s8 + $0x8] sm:$0xff]  ;;  %v1508_v6 = vmov 2131351028   ;;  %s1294_s10 = sshll.u32 %s1514_s25, 4  ;;  %s1295_s10 = int_to_ptr.vmem [resolvable:$true] %s1294_s10 }
  0x11   :  { %88 = vperm.xlu1 %1442, %v49_v13   ;;  %83 = vperm.xlu0 %1441, %v48_v14   ;;  %v1035_v22 = vld [vmem:[%s2403_s6 + $0x10] sm:$0xff]  ;;  %v1137_v24 = vld [vmem:[%s2405_s8] sm:$0xff]  ;;  %v1140_v25 = vld [vmem:[%s2405_s8 + $0x18] sm:$0xff]  ;;  %v1509_v8 = vmov 2102212464   ;;  %s1481_s26 = scalar_lea.vmem %s1295_s10, 16  ;;  %p1486_p1 = scmp.lt.s32.totalorder %s1295_s10, %s1295_s10 }
  0x12   :  { %v1139_v26 = vld [vmem:[%s2405_s8 + $0x10] sm:$0xff]  ;;  %v1234_v27 = vld [vmem:[#allocation2] sm:$0x1]  ;;  %v1510_v10 = vmov 920167782   ;;  %p1482_p0 = scmp.ne.s32.totalorder %s1295_s10, %s1481_s26  ;;  %s1485_s27 = scalar_lea.vmem %s1295_s10, 32 }
  0x13   :  { %v1650_v28 = vld [vmem:[%s2397_s0] ss:$0 sm:$0xff]  ;;  %p1487_p2 = scmp.lt.s32.totalorder %s1485_s27, %s1481_s26 }
  0x15   :  { %948 = vperm.xlu1 %1442, %v938_v15   ;;  %943 = vperm.xlu0 %1441, %v937_v16   ;;  %p1488_p3 = por %p1487_p2, %p1486_p1 }
  0x17   :  { %p1489_p4 = pnand %p1488_p3, %p1482_p0 }
  0x19   :  { %1044 = vperm.xlu1 %1442, %v1034_v17   ;;  %1039 = vperm.xlu0 %1441, %v1033_v18   ;;  %v1511_v18 = vmov 1326507024  }
  0x1d   :  { %958 = vperm.xlu1 %1442, %v940_v19   ;;  %953 = vperm.xlu0 %1441, %v939_v20  }
  0x21   :  { %1054 = vperm.xlu1 %1442, %v1036_v21   ;;  %1049 = vperm.xlu0 %1441, %v1035_v22  }
  0x25   :  { %1148 = vperm.xlu1 %1442, %v1138_v23   ;;  %1143 = vperm.xlu0 %1441, %v1137_v24  }
  0x29   :  { %1158 = vperm.xlu1 %1442, %v1140_v25   ;;  %1153 = vperm.xlu0 %1441, %v1139_v26  }
  0x2d   :  { %1237 = vperm.xlu0 %1441, %v1234_v27  }
  0x84   :  { %v64_v29 = vpop.permute.xlu1 %63  ;;  %v54_v30 = vpop.permute.xlu0 %53 }
  0x85   :  { %v1653_v31 = vmul.f32 %v1650_v28, %v64_v29  ;;  %v1656_v32 = vmul.f32 %v1650_v28, %v54_v30 }
  0x87   :  { %v311_v33 = vand.u32 2147483647, %v1653_v31  ;;  %v314_v34 = vand.u32 2139095040, %v1653_v31  ;;  %v105_v35 = vand.u32 2147483647, %v1656_v32  ;;  %v108_v36 = vand.u32 2139095040, %v1656_v32 }
  0x88   :  { %v69_v37 = vpop.permute.xlu1 %68  ;;  %v59_v49 = vpop.permute.xlu0 %58 }
  0x89   :  { %v315_v38 = vshrl.u32 %v314_v34, 23  ;;  %v318_v39 = vand.u32 8388607, %v311_v33  ;;  %v1665_v40 = vmul.f32 %v1650_v28, %v69_v37  ;;  %v109_v41 = vshrl.u32 %v108_v36, 23 }
  0x8a   :  { %v112_v42 = vand.u32 8388607, %v105_v35  ;;  %v1676_v56 = vmul.f32 %v1650_v28, %v59_v49 }
  0x8b   :  { %v1311_v43 = vadd.s32 4294967169, %v315_v38  ;;  %v414_v44 = vand.u32 2147483647, %v1665_v40  ;;  %v1303_v45 = vadd.s32 4294967169, %v109_v41  ;;  %v417_v46 = vand.u32 2139095040, %v1665_v40 }
  0x8c   :  { %v319_v47 = vor.u32 8388608, %v318_v39  ;;  %v113_v50 = vor.u32 8388608, %v112_v42 }
  0x8d   :  { %v321_v48 = vadd.s32 1, %v1311_v43  ;;  %v115_v51 = vadd.s32 1, %v1303_v45  ;;  %v418_v52 = vshrl.u32 %v417_v46, 23  ;;  %v1673_v53 = vand.u32 8388607, %v414_v44 }
  0x8e   :  { %v1678_v59 = vshll.u32 %v319_v47, 8  ;;  %v1682_v63 = vshll.u32 %v113_v50, 8 }
  0x8f   :  { %vm322_vm2 = vcmp.gt.s32.totalorder %v321_v48, 0  ;;  %vm116_vm3 = vcmp.gt.s32.totalorder %v115_v51, 0  ;;  %v1315_v55 = vadd.s32 4294967169, %v418_v52  ;;  %v422_v0 = vor.u32 8388608, %v1673_v53 }
  0x90   :  { %v323_v54 = vsel %vm322_vm2, %v321_v48, 0  ;;  %v117_v60 = vsel %vm116_vm3, %v115_v51, 0 }
  0x91   :  { %v324_v57 = vshrl.u32 %v323_v54, 5  ;;  %v325_v58 = vand.u32 31, %v323_v54  ;;  %v1680_v61 = vshrl.u32 %v117_v60, 5  ;;  %v119_v62 = vand.u32 31, %v117_v60 }
  0x92   :  { %v1690_v12 = vadd.s32 1, %v1315_v55 }
  0x93   :  { %v326_v1 = vsub.s32 32, %v325_v58  ;;  %v328_v3 = vshll.u32 %v1506_v2, %v325_v58  ;;  %v331_v5 = vshll.u32 %v1507_v4, %v325_v58  ;;  %v334_v7 = vshll.u32 %v1508_v6, %v325_v58 }
  0x94   :  { %v337_v9 = vshll.u32 %v1509_v8, %v325_v58  ;;  %v340_v11 = vshll.u32 %v1510_v10, %v325_v58  ;;  %vm343_vm4 = vcmp.lt.s32.totalorder %v324_v57, 1  ;;  %vm344_vm5 = vcmp.lt.s32.totalorder %v324_v57, 2 }
  0x95   :  { %v327_v13 = vshrl.u32 %v1506_v2, %v326_v1  ;;  %v329_v14 = vshrl.u32 %v1507_v4, %v326_v1  ;;  %v332_v15 = vshrl.u32 %v1508_v6, %v326_v1  ;;  %v335_v16 = vshrl.u32 %v1509_v8, %v326_v1 }
  0x96   :  { %v338_v17 = vshrl.u32 %v1510_v10, %v326_v1  ;;  %v341_v19 = vshrl.u32 %v1511_v18, %v326_v1  ;;  %vm345_vm6 = vcmp.lt.s32.totalorder %v324_v57, 3  ;;  %v120_v23 = vsub.s32 32, %v119_v62 }
  0x97   :  { %v330_v20 = vor.u32 %v329_v14, %v328_v3  ;;  %v333_v21 = vor.u32 %v332_v15, %v331_v5  ;;  %v336_v22 = vor.u32 %v335_v16, %v334_v7  ;;  %vm346_vm7 = vcmp.lt.s32.totalorder %v324_v57, 4 }
  0x98   :  { %v339_v24 = vor.u32 %v338_v17, %v337_v9  ;;  %v342_v25 = vor.u32 %v341_v19, %v340_v11  ;;  %v122_v26 = vshll.u32 %v1506_v2, %v119_v62  ;;  %v125_v39 = vshll.u32 %v1507_v4, %v119_v62 }
  0x99   :  { %v347_v27 = vsel %vm343_vm4, %v327_v13, %v330_v20  ;;  %v348_v29 = vsel %vm346_vm7, %v336_v22, 2102212464  ;;  %v351_v30 = vsel %vm343_vm4, %v330_v20, %v333_v21  ;;  %v355_v34 = vsel %vm343_vm4, %v333_v21, %v336_v22 }
  0x9a   :  { %v349_v36 = vsel %vm345_vm6, %v333_v21, %v348_v29  ;;  %v352_v37 = vsel %vm346_vm7, %v339_v24, 920167782  ;;  %v356_v38 = vsel %vm346_vm7, %v342_v25, 1326507024  ;;  %v121_v43 = vshrl.u32 %v1506_v2, %v120_v23 }
  0x9b   :  { %v353_v41 = vsel %vm345_vm6, %v336_v22, %v352_v37  ;;  %v357_v42 = vsel %vm345_vm6, %v339_v24, %v356_v38  ;;  %v123_v45 = vshrl.u32 %v1507_v4, %v120_v23  ;;  %v350_v46 = vsel %vm344_vm5, %v347_v27, %v349_v36 }
  0x9c   :  { %v354_v47 = vsel %vm344_vm5, %v351_v30, %v353_v41  ;;  %v358_v48 = vsel %vm344_vm5, %v355_v34, %v357_v42  ;;  %v126_v49 = vshrl.u32 %v1508_v6, %v120_v23  ;;  %v128_v60 = vshll.u32 %v1508_v6, %v119_v62 }
  0x9d   :  { %v1713_v50 = vmul.u32.u64.low %v1678_v59, %v358_v48  ;;  %v1714_v51 = vmul.u32.u64.high %v1678_v59, %v358_v48, %v1713_v50  ;;  %v1717_v52 = vmul.u32.u64.low %v1678_v59, %v354_v47  ;;  %v1718_v54 = vmul.u32.u64.high %v1678_v59, %v354_v47, %v1717_v52 }
  0x9e   :  { %v124_v55 = vor.u32 %v123_v45, %v122_v26  ;;  %v127_v58 = vor.u32 %v126_v49, %v125_v39  ;;  %v129_v1 = vshrl.u32 %v1509_v8, %v120_v23  ;;  %v366_v57 = vmul.u32 %v1678_v59, %v350_v46 }
  0x9f   :  { %v131_v3 = vshll.u32 %v1509_v8, %v119_v62  ;;  %v132_v5 = vshrl.u32 %v1510_v10, %v120_v23  ;;  %v135_v7 = vshrl.u32 %v1511_v18, %v120_v23  ;;  %v134_v11 = vshll.u32 %v1510_v10, %v119_v62 }
  0xa0   :  { %v130_v9 = vor.u32 %v129_v1, %v128_v60  ;;  %vm137_vm8 = vcmp.lt.s32.totalorder %v1680_v61, 1  ;;  %vm138_vm9 = vcmp.lt.s32.totalorder %v1680_v61, 2  ;;  %vm368_vm10 = vc.u32 %v1714_v51, %v1717_v52 }
  0xa1   :  { %v369_v13 = vadd.s32 1, %v1718_v54  ;;  %v133_v14 = vor.u32 %v132_v5, %v131_v3  ;;  %vm139_vm11 = vcmp.lt.s32.totalorder %v1680_v61, 3  ;;  %v136_v59 = vor.u32 %v135_v7, %v134_v11 }
  0xa2   :  { %vm140_vm12 = vcmp.lt.s32.totalorder %v1680_v61, 4  ;;  %v141_v15 = vsel %vm137_vm8, %v121_v43, %v124_v55  ;;  %v145_v16 = vsel %vm137_vm8, %v124_v55, %v127_v58  ;;  %v149_v20 = vsel %vm137_vm8, %v127_v58, %v130_v9 }
  0xa3   :  { %v370_v17 = vsel %vm368_vm10, %v369_v13, %v1718_v54  ;;  %v142_v62 = vsel %vm140_vm12, %v130_v9, 2102212464  ;;  %v146_v19 = vsel %vm140_vm12, %v133_v14, 920167782  ;;  %v150_v24 = vsel %vm140_vm12, %v136_v59, 1326507024 }
  0xa4   :  { %v371_v21 = vadd.s32 %v370_v17, %v366_v57  ;;  %v143_v22 = vsel %vm139_vm11, %v127_v58, %v142_v62  ;;  %v147_v23 = vsel %vm139_vm11, %v130_v9, %v146_v19  ;;  %v151_v26 = vsel %vm139_vm11, %v133_v14, %v150_v24 }
  0xa5   :  { %v148_v25 = vsel %vm138_vm9, %v145_v16, %v147_v23  ;;  %vm425_vm13 = vcmp.gt.s32.totalorder %v1690_v12, 0  ;;  %v211_v27 = vand.u32 2139095040, %v1676_v56  ;;  %v152_v30 = vsel %vm138_vm9, %v149_v20, %v151_v26 }
  0xa6   :  { %v372_v29 = vadd.s32 536870912, %v371_v21  ;;  %v1743_v34 = vmul.u32.u64.low %v1682_v63, %v148_v25  ;;  %v1744_v36 = vmul.u32.u64.high %v1682_v63, %v148_v25, %v1743_v34  ;;  %v144_v37 = vsel %vm138_vm9, %v141_v15, %v143_v22 }
  0xa7   :  { %v1750_v38 = vmul.u32.u64.low %v1682_v63, %v152_v30  ;;  %v1751_v39 = vmul.u32.u64.high %v1682_v63, %v152_v30, %v1750_v38  ;;  %v426_v41 = vsel %vm425_vm13, %v1690_v12, 0  ;;  %v1758_v45 = vshll.u32 %v422_v0, 8 }
  0xa8   :  { %v1754_v42 = vshrl.u32 %v372_v29, 30  ;;  %v428_v43 = vand.u32 31, %v426_v41  ;;  %v2410_v46 = vand.u32 2147483647, %v1676_v56  ;;  %v212_v47 = vshrl.u32 %v211_v27, 23 }
  0xa9   :  { %v160_v61 = vmul.u32 %v1682_v63, %v144_v37  ;;  %v163_v49 = vadd.s32 1, %v1744_v36  ;;  %vm162_vm14 = vc.u32 %v1751_v39, %v1743_v34  ;;  %v427_v12 = vshrl.u32 %v426_v41, 5 }
  0xaa   :  { %v374_v48 = vshll.u32 %v1754_v42, 30  ;;  %v429_v50 = vsub.s32 32, %v428_v43  ;;  %v431_v54 = vshll.u32 %v1506_v2, %v428_v43  ;;  %v434_v53 = vshll.u32 %v1507_v4, %v428_v43 }
  0xab   :  { %v164_v55 = vsel %vm162_vm14, %v163_v49, %v1744_v36  ;;  %v437_v60 = vshll.u32 %v1508_v6, %v428_v43  ;;  %v440_v3 = vshll.u32 %v1509_v8, %v428_v43  ;;  %v443_v11 = vshll.u32 %v1510_v10, %v428_v43 }
  0xac   :  { %v1768_v0 = vsub.s32 %v371_v21, %v374_v48  ;;  %v432_v58 = vshrl.u32 %v1507_v4, %v429_v50  ;;  %v165_v63 = vadd.s32 %v164_v55, %v160_v61  ;;  %v435_v1 = vshrl.u32 %v1508_v6, %v429_v50 }
  0xad   :  { %v438_v57 = vshrl.u32 %v1509_v8, %v429_v50  ;;  %v441_v9 = vshrl.u32 %v1510_v10, %v429_v50  ;;  %v444_v15 = vshrl.u32 %v1511_v18, %v429_v50  ;;  %v430_v17 = vshrl.u32 %v1506_v2, %v429_v50  ;;  %v79_v50 = vpop.permute.xlu1 %78 }
  0xae   :  { %v377_v5 = vsub.s32 0, %v1768_v0  ;;  %v433_v7 = vor.u32 %v432_v58, %v431_v54  ;;  %v166_v13 = vadd.s32 536870912, %v165_v63  ;;  %v436_v14 = vor.u32 %v435_v1, %v434_v53 }
  0xaf   :  { %v439_v59 = vor.u32 %v438_v57, %v437_v60  ;;  %v442_v62 = vor.u32 %v441_v9, %v440_v3  ;;  %v1307_v19 = vadd.s32 4294967169, %v212_v47  ;;  %v445_v21 = vor.u32 %v444_v15, %v443_v11 }
  0xb0   :  { %v1312_v16 = vmin.u32 %v377_v5, %v1768_v0  ;;  %v1782_v20 = vshrl.u32 %v166_v13, 30  ;;  %vm446_vm15 = vcmp.lt.s32.totalorder %v427_v12, 1  ;;  %vm449_vm0 = vcmp.lt.s32.totalorder %v427_v12, 4 }
  0xb1   :  { %vm447_vm1 = vcmp.lt.s32.totalorder %v427_v12, 2  ;;  %v451_v23 = vsel %vm449_vm0, %v439_v59, 2102212464  ;;  %v454_v24 = vsel %vm446_vm15, %v433_v7, %v436_v14  ;;  %vm448_vm2 = vcmp.lt.s32.totalorder %v427_v12, 3 }
  0xb2   :  { %v379_v22 = vclz %v1312_v16  ;;  %v168_v25 = vshll.u32 %v1782_v20, 30  ;;  %v455_v26 = vsel %vm449_vm0, %v442_v62, 920167782  ;;  %v458_v27 = vsel %vm446_vm15, %v436_v14, %v439_v59 }
  0xb3   :  { %v450_v30 = vsel %vm446_vm15, %v430_v17, %v433_v7  ;;  %v456_v36 = vsel %vm448_vm2, %v439_v59, %v455_v26  ;;  %v459_v37 = vsel %vm449_vm0, %v445_v21, 1326507024  ;;  %v452_v41 = vsel %vm448_vm2, %v436_v14, %v451_v23 }
  0xb4   :  { %v1313_v29 = vadd.s32 4294967294, %v379_v22  ;;  %v1785_v38 = vsub.s32 %v165_v63, %v168_v25  ;;  %v457_v43 = vsel %vm447_vm1, %v454_v24, %v456_v36  ;;  %v460_v47 = vsel %vm448_vm2, %v442_v62, %v459_v37 }
  0xb5   :  { %v461_v48 = vsel %vm447_vm1, %v458_v27, %v460_v47  ;;  %v1790_v61 = vmul.u32.u64.low %v1758_v45, %v457_v43  ;;  %v1791_v49 = vmul.u32.u64.high %v1758_v45, %v457_v43, %v1790_v61  ;;  %v453_v1 = vsel %vm447_vm1, %v450_v30, %v452_v41 }
  0xb6   :  { %vm1314_vm3 = vcmp.lt.s32.totalorder %v1313_v29, 0  ;;  %v171_v53 = vsub.s32 0, %v1785_v38  ;;  %v1796_v55 = vmul.u32.u64.low %v1758_v45, %v461_v48  ;;  %v1797_v58 = vmul.u32.u64.high %v1758_v45, %v461_v48, %v1796_v55 }
  0xb7   :  { %v382_v54 = vsel %vm1314_vm3, 0, %v1313_v29  ;;  %v218_v57 = vadd.s32 1, %v1307_v19  ;;  %v1802_v5 = vmul.f32 %v1650_v28, %v79_v50  ;;  %v367_v7 = vadd.s32 %v1717_v52, %v1714_v51 }
  0xb8   :  { %v383_v60 = vsub.s32 32, %v382_v54  ;;  %v387_v63 = vsub.s32 4294967266, %v382_v54  ;;  %v1304_v3 = vmin.u32 %v171_v53, %v1785_v38  ;;  %v472_v11 = vadd.s32 1, %v1791_v49 }
  0xb9   :  { %vm219_vm4 = vcmp.gt.s32.totalorder %v218_v57, 0  ;;  %v469_v14 = vmul.u32 %v1758_v45, %v453_v1  ;;  %vm471_vm5 = vc.u32 %v1797_v58, %v1790_v61  ;;  %v215_v17 = vand.u32 8388607, %v2410_v46 }
  0xba   :  { %v388_v9 = vadd.s32 127, %v387_v63  ;;  %v173_v13 = vclz %v1304_v3  ;;  %v220_v12 = vsel %vm219_vm4, %v218_v57, 0  ;;  %v385_v59 = vshrl.u32 %v367_v7, %v383_v60 }
  0xbb   :  { %v473_v16 = vsel %vm471_vm5, %v472_v11, %v1791_v49  ;;  %v222_v52 = vand.u32 31, %v220_v12  ;;  %v623_v19 = vand.u32 2139095040, %v1802_v5  ;;  %v384_v21 = vshll.u32 %v1768_v0, %v382_v54 }
  0xbc   :  { %v389_v15 = vshll.u32 %v388_v9, 23  ;;  %v1305_v62 = vadd.s32 4294967294, %v173_v13  ;;  %v474_v51 = vadd.s32 %v473_v16, %v469_v14  ;;  %v216_v25 = vor.u32 8388608, %v215_v17 }
  0xbd   :  { %v223_v23 = vsub.s32 32, %v222_v52  ;;  %v386_v24 = vor.u32 %v385_v59, %v384_v21  ;;  %v2412_v26 = vand.u32 2147483647, %v1802_v5  ;;  %v161_v27 = vadd.s32 %v1743_v34, %v1751_v39 }
  0xbe   :  { %v390_v22 = vor.u32 4788187, %v389_v15  ;;  %vm1306_vm6 = vcmp.lt.s32.totalorder %v1305_v62, 0  ;;  %v475_v45 = vadd.s32 536870912, %v474_v51  ;;  %v624_v36 = vshrl.u32 %v623_v19, 23 }
  0xbf   :  { %v1818_v29 = vsel %vm1306_vm6, 0, %v1305_v62  ;;  %v221_v37 = vshrl.u32 %v220_v12, 5  ;;  %v225_v41 = vshll.u32 %v1506_v2, %v222_v52  ;;  %v226_v0 = vshrl.u32 %v1507_v4, %v223_v23 }
  0xc0   :  { %v1820_v30 = vshrl.u32 %v475_v45, 30  ;;  %v229_v43 = vshrl.u32 %v1508_v6, %v223_v23  ;;  %v391_v47 = vand.u32 2147483647, %v390_v22  ;;  %v228_v49 = vshll.u32 %v1507_v4, %v222_v52 }
  0xc1   :  { %v232_v50 = vshrl.u32 %v1509_v8, %v223_v23  ;;  %v393_v34 = vcvt.s32.f32 %v386_v24  ;;  %v181_v39 = vsub.s32 4294967266, %v1818_v29  ;;  %v231_v54 = vshll.u32 %v1508_v6, %v222_v52 }
  0xc2   :  { %v477_v48 = vshll.u32 %v1820_v30, 30  ;;  %v1830_v53 = vshll.u32 %v216_v25, 8  ;;  %v227_v60 = vor.u32 %v226_v0, %v225_v41  ;;  %v230_v63 = vor.u32 %v229_v43, %v228_v49 }
  0xc3   :  { %v234_v1 = vshll.u32 %v1509_v8, %v222_v52  ;;  %vm313_vm7 = vcmp.lt.s32.totalorder %v1653_v31, 0  ;;  %v233_v57 = vor.u32 %v232_v50, %v231_v54  ;;  %v235_v3 = vshrl.u32 %v1510_v10, %v223_v23 }
  0xc4   :  { %v1832_v55 = vsub.s32 %v474_v51, %v477_v48  ;;  %v237_v7 = vshll.u32 %v1510_v10, %v222_v52  ;;  %v238_v9 = vshrl.u32 %v1511_v18, %v223_v23  ;;  %v394_v11 = vmul.f32 %v393_v34, %v391_v47 }
  0xc5   :  { %vm240_vm8 = vcmp.lt.s32.totalorder %v221_v37, 1  ;;  %v1323_v14 = vadd.s32 4294967169, %v624_v36  ;;  %v177_v12 = vsub.s32 32, %v1818_v29  ;;  %v236_v59 = vor.u32 %v235_v3, %v234_v1 }
  0xc6   :  { %v480_v13 = vsub.s32 0, %v1832_v55  ;;  %v239_v15 = vor.u32 %v238_v9, %v237_v7  ;;  %vm241_vm9 = vcmp.lt.s32.totalorder %v221_v37, 2  ;;  %v178_v16 = vshll.u32 %v1785_v38, %v1818_v29 }
  0xc7   :  { %v182_v17 = vadd.s32 127, %v181_v39  ;;  %vm243_vm10 = vcmp.lt.s32.totalorder %v221_v37, 4  ;;  %vm242_vm11 = vcmp.lt.s32.totalorder %v221_v37, 3  ;;  %v248_v52 = vsel %vm240_vm8, %v227_v60, %v230_v63 }
  0xc8   :  { %v1316_v62 = vmin.u32 %v480_v13, %v1832_v55  ;;  %v245_v51 = vsel %vm243_vm10, %v233_v57, 2102212464  ;;  %v249_v19 = vsel %vm243_vm10, %v236_v59, 920167782  ;;  %v395_v21 = vxor.u32 2147483648, %v394_v11 }
  0xc9   :  { %v224_v45 = vshrl.u32 %v1506_v2, %v223_v23  ;;  %v250_v24 = vsel %vm242_vm11, %v233_v57, %v249_v19  ;;  %v179_v25 = vshrl.u32 %v161_v27, %v177_v12  ;;  %v252_v41 = vsel %vm240_vm8, %v230_v63, %v233_v57 }
  0xca   :  { %v482_v22 = vclz %v1316_v62  ;;  %v251_v36 = vsel %vm241_vm9, %v248_v52, %v250_v24  ;;  %v253_v38 = vsel %vm243_vm10, %v239_v15, 1326507024  ;;  %v246_v43 = vsel %vm242_vm11, %v230_v63, %v245_v51 }
  0xcb   :  { %v244_v0 = vsel %vm240_vm8, %v224_v45, %v227_v60  ;;  %v254_v47 = vsel %vm242_vm11, %v236_v59, %v253_v38  ;;  %v183_v48 = vshll.u32 %v182_v17, 23  ;;  %v396_v23 = vsel %vm313_vm7, %v395_v21, %v394_v11  ;;  %v74_v11 = vpop.permute.xlu0 %73  ;;  %v89_v17 = vpop.permute.xlu1 %88 }
  0xcc   :  { %v1317_v29 = vadd.s32 4294967294, %v482_v22  ;;  %v255_v49 = vsel %vm241_vm9, %v252_v41, %v254_v47  ;;  %v1851_v50 = vmul.u32.u64.low %v1830_v53, %v251_v36  ;;  %v1852_v34 = vmul.u32.u64.high %v1830_v53, %v251_v36, %v1851_v50 }
  0xcd   :  { %v1858_v27 = vmul.u32.u64.low %v1830_v53, %v255_v49  ;;  %v1859_v39 = vmul.u32.u64.high %v1830_v53, %v255_v49, %v1858_v27  ;;  %vm1863_vm13 = vcmp.le.f32.partialorder %v311_v33, 0.7853982  ;;  %v247_v63 = vsel %vm241_vm9, %v244_v0, %v246_v43 }
  0xce   :  { %vm1318_vm12 = vcmp.lt.s32.totalorder %v1317_v29, 0  ;;  %v630_v1 = vadd.s32 1, %v1323_v14  ;;  %v1868_v57 = vor.u32 %v179_v25, %v178_v16  ;;  %v470_v3 = vadd.s32 %v1790_v61, %v1797_v58 }
  0xcf   :  { %v485_v60 = vsel %vm1318_vm12, 0, %v1317_v29  ;;  %v1875_v13 = vsel %vm1863_vm13, %v1653_v31, %v396_v23  ;;  %v1877_v33 = vor.u32 4788187, %v183_v48  ;;  %v266_v12 = vadd.s32 1, %v1852_v34 }
  0xd0   :  { %v486_v7 = vsub.s32 32, %v485_v60  ;;  %v490_v9 = vsub.s32 4294967266, %v485_v60  ;;  %vm631_vm14 = vcmp.gt.s32.totalorder %v630_v1, 0  ;;  %v263_v14 = vmul.u32 %v1830_v53, %v247_v63 }
  0xd1   :  { %vm265_vm15 = vc.u32 %v1859_v39, %v1851_v50  ;;  %v627_v61 = vand.u32 8388607, %v2412_v26  ;;  %v632_v15 = vsel %vm631_vm14, %v630_v1, 0  ;;  %v1887_v16 = vmul.f32 %v1650_v28, %v74_v11 }
  0xd2   :  { %v491_v37 = vadd.s32 127, %v490_v9  ;;  %v488_v58 = vshrl.u32 %v470_v3, %v486_v7  ;;  %v267_v59 = vsel %vm265_vm15, %v266_v12, %v1852_v34  ;;  %v187_v62 = vcvt.s32.f32 %v1868_v57 }
  0xd3   :  { %v268_v52 = vadd.s32 %v267_v59, %v263_v14  ;;  %1449 = vcosq.f32 %v1875_v13  ;;  %v185_v53 = vand.u32 2147483647, %v1877_v33  ;;  %v487_v19 = vshll.u32 %v1832_v55, %v485_v60 }
  0xd4   :  { %v492_v51 = vshll.u32 %v491_v37, 23  ;;  %v634_v21 = vand.u32 31, %v632_v15  ;;  %v628_v24 = vor.u32 8388608, %v627_v61  ;;  %v1894_v25 = vmul.f32 %v1650_v28, %v89_v17 }
  0xd5   :  { %v269_v45 = vadd.s32 536870912, %v268_v52  ;;  %v489_v36 = vor.u32 %v488_v58, %v487_v19  ;;  %v1896_v41 = vshrl.u32 %v632_v15, 5  ;;  %v2411_v29 = vand.u32 2147483647, %v1887_v16 }
  0xd6   :  { %v493_v22 = vor.u32 4788187, %v492_v51  ;;  %v635_v38 = vsub.s32 32, %v634_v21  ;;  %v637_v43 = vshll.u32 %v1506_v2, %v634_v21  ;;  %v640_v47 = vshll.u32 %v1507_v4, %v634_v21 }
  0xd7   :  { %v1899_v0 = vshrl.u32 %v269_v45, 30  ;;  %v643_v55 = vshll.u32 %v1508_v6, %v634_v21  ;;  %v646_v60 = vshll.u32 %v1509_v8, %v634_v21  ;;  %v649_v11 = vshll.u32 %v1510_v10, %v634_v21 }
  0xd8   :  { %v494_v48 = vand.u32 2147483647, %v493_v22  ;;  %v638_v49 = vshrl.u32 %v1507_v4, %v635_v38  ;;  %v641_v34 = vshrl.u32 %v1508_v6, %v635_v38  ;;  %v644_v23 = vshrl.u32 %v1509_v8, %v635_v38 }
  0xd9   :  { %v271_v27 = vshll.u32 %v1899_v0, 30  ;;  %v647_v63 = vshrl.u32 %v1510_v10, %v635_v38  ;;  %v650_v1 = vshrl.u32 %v1511_v18, %v635_v38  ;;  %vm652_vm0 = vcmp.lt.s32.totalorder %v1896_v41, 1 }
  0xda   :  { %v639_v3 = vor.u32 %v638_v49, %v637_v43  ;;  %v642_v7 = vor.u32 %v641_v34, %v640_v47  ;;  %v645_v9 = vor.u32 %v644_v23, %v643_v55  ;;  %v1915_v14 = vshll.u32 %v628_v24, 8 }
  0xdb   :  { %v1912_v12 = vsub.s32 %v268_v52, %v271_v27  ;;  %v648_v37 = vor.u32 %v647_v63, %v646_v60  ;;  %v496_v58 = vcvt.s32.f32 %v489_v36  ;;  %v651_v59 = vor.u32 %v650_v1, %v649_v11 }
  0xdc   :  { %vm655_vm1 = vcmp.lt.s32.totalorder %v1896_v41, 4  ;;  %v660_v15 = vsel %vm652_vm0, %v639_v3, %v642_v7  ;;  %vm416_vm2 = vcmp.lt.s32.totalorder %v1665_v40, 0  ;;  %vm654_vm3 = vcmp.lt.s32.totalorder %v1896_v41, 3 }
  0xdd   :  { %v274_v51 = vsub.s32 0, %v1912_v12  ;;  %v661_v52 = vsel %vm655_vm1, %v648_v37, 920167782  ;;  %v520_v19 = vand.u32 2139095040, %v1887_v16  ;;  %v1932_v22 = vpop.eup %1449  ;;  %v497_v45 = vmul.f32 %v496_v58, %v494_v48 }
  0xde   :  { %v1917_v61 = vpop.f32.mrb[0].mxu1  ;;  %vm653_vm4 = vcmp.lt.s32.totalorder %v1896_v41, 2  ;;  %v662_v24 = vsel %vm654_vm3, %v645_v9, %v661_v52  ;;  %v524_v36 = vand.u32 8388607, %v2411_v29  ;;  %v657_v55 = vsel %vm655_vm1, %v645_v9, 2102212464 }
  0xdf   :  { %v1922_v17 = vpop.f32.mrb[1].mxu1  ;;  %v1308_v47 = vmin.u32 %v274_v51, %v1912_v12  ;;  %v663_v49 = vsel %vm653_vm4, %v660_v15, %v662_v24  ;;  %v664_v48 = vsel %vm652_vm0, %v642_v7, %v645_v9  ;;  %v636_v34 = vshrl.u32 %v1506_v2, %v635_v38 }
  0xe0   :  { %v1930_v21 = vpop.f32.mrb[2].mxu1  ;;  %v665_v23 = vsel %vm655_vm1, %v651_v59, 1326507024  ;;  %v1952_v27 = vmul.u32.u64.low %v1915_v14, %v663_v49  ;;  %v1953_v60 = vmul.u32.u64.high %v1915_v14, %v663_v49, %v1952_v27  ;;  %v521_v11 = vshrl.u32 %v520_v19, 23 }
  0xe1   :  { %v1939_v43 = vpop.f32.mrb[3].mxu1  ;;  %v276_v63 = vclz %v1308_v47  ;;  %v666_v1 = vsel %vm654_vm3, %v648_v37, %v665_v23  ;;  %v2409_v58 = vand.u32 2147483647, %v1894_v25  ;;  %v498_v15 = vxor.u32 2147483648, %v497_v45 }
  0xe2   :  { %v656_v9 = vsel %vm652_vm0, %v636_v34, %v639_v3  ;;  %v658_v38 = vsel %vm654_vm3, %v642_v7, %v657_v55  ;;  %v667_v59 = vsel %vm653_vm4, %v664_v48, %v666_v1  ;;  %v1319_v47 = vadd.s32 4294967169, %v521_v11 }
  0xe3   :  { %v1309_v51 = vadd.s32 4294967294, %v276_v63  ;;  %v1966_v52 = vmul.u32.u64.low %v1915_v14, %v667_v59  ;;  %v1967_v24 = vmul.u32.u64.high %v1915_v14, %v667_v59, %v1966_v52  ;;  %1451 = vsinq.f32 %v1875_v13 }
  0xe4   :  { %v1974_v37 = vmul.f32 %v187_v62, %v185_v53  ;;  %vm1978_vm5 = vcmp.le.f32.partialorder %v414_v44, 0.7853982  ;;  %v829_v7 = vand.u32 2139095040, %v1894_v25  ;;  %v659_v19 = vsel %vm653_vm4, %v656_v9, %v658_v38 }
  0xe5   :  { %vm1310_vm6 = vcmp.lt.s32.totalorder %v1309_v51, 0  ;;  %v678_v13 = vadd.s32 1, %v1953_v60  ;;  %v527_v55 = vadd.s32 1, %v1319_v47  ;;  %v499_v57 = vsel %vm416_vm2, %v498_v15, %v497_v45  ;;  %v84_v45 = vpop.permute.xlu0 %83 }
  0xe6   :  { %v264_v33 = vadd.s32 %v1851_v50, %v1859_v39  ;;  %v279_v62 = vsel %vm1310_vm6, 0, %v1309_v51  ;;  %v830_v44 = vshrl.u32 %v829_v7, 23  ;;  %v525_v48 = vor.u32 8388608, %v524_v36 }
  0xe7   :  { %v280_v53 = vsub.s32 32, %v279_v62  ;;  %v284_v49 = vsub.s32 4294967266, %v279_v62  ;;  %v1992_v34 = vand.u32 8388607, %v2409_v58  ;;  %v675_v41 = vmul.u32 %v1915_v14, %v659_v19 }
  0xe8   :  { %vm677_vm8 = vc.u32 %v1967_v24, %v1952_v27  ;;  %vm528_vm9 = vcmp.gt.s32.totalorder %v527_v55, 0  ;;  %v1331_v23 = vadd.s32 4294967169, %v830_v44  ;;  %v2002_v36 = vsel %vm1978_vm5, %v1665_v40, %v499_v57 }
  0xe9   :  { %v282_v63 = vshrl.u32 %v264_v33, %v280_v53  ;;  %v285_v1 = vadd.s32 127, %v284_v49  ;;  %v679_v50 = vsel %vm677_vm8, %v678_v13, %v1953_v60  ;;  %v529_v39 = vsel %vm528_vm9, %v527_v55, 0 }
  0xea   :  { %v680_v15 = vadd.s32 %v679_v50, %v675_v41  ;;  %v531_v14 = vand.u32 31, %v529_v39  ;;  %v281_v9 = vshll.u32 %v1912_v12, %v279_v62  ;;  %v2005_v38 = vshll.u32 %v525_v48, 8 }
  0xeb   :  { %v834_v59 = vor.u32 8388608, %v1992_v34  ;;  %v2009_v51 = vmul.f32 %v1650_v28, %v84_v45  ;;  %v530_v52 = vshrl.u32 %v529_v39, 5  ;;  %v836_v7 = vadd.s32 1, %v1331_v23 }
  0xec   :  { %v681_v60 = vadd.s32 536870912, %v680_v15  ;;  %v532_v47 = vsub.s32 32, %v531_v14  ;;  %v283_v19 = vor.u32 %v282_v63, %v281_v9  ;;  %v286_v13 = vshll.u32 %v285_v1, 23 }
  0xed   :  { %v534_v55 = vshll.u32 %v1506_v2, %v531_v14  ;;  %v537_v57 = vshll.u32 %v1507_v4, %v531_v14  ;;  %v2013_v33 = vpop.eup %1451  ;;  %v540_v28 = vshll.u32 %v1508_v6, %v531_v14  ;;  %v543_v49 = vshll.u32 %v1509_v8, %v531_v14 }
  0xee   :  { %v2015_v12 = vshrl.u32 %v681_v60, 30  ;;  %v535_v62 = vshrl.u32 %v1507_v4, %v532_v47  ;;  %v538_v44 = vshrl.u32 %v1508_v6, %v532_v47  ;;  %v541_v53 = vshrl.u32 %v1509_v8, %v532_v47 }
  0xef   :  { %v544_v48 = vshrl.u32 %v1510_v10, %v532_v47  ;;  %v546_v34 = vshll.u32 %v1510_v10, %v531_v14  ;;  %v547_v63 = vshrl.u32 %v1511_v18, %v532_v47  ;;  %v533_v1 = vshrl.u32 %v1506_v2, %v532_v47 }
  0xf0   :  { %v683_v41 = vshll.u32 %v2015_v12, 30  ;;  %v536_v23 = vor.u32 %v535_v62, %v534_v55  ;;  %v539_v45 = vor.u32 %v538_v44, %v537_v57  ;;  %v542_v50 = vor.u32 %v541_v53, %v540_v28 }
  0xf1   :  { %v545_v39 = vor.u32 %v544_v48, %v543_v49  ;;  %v2413_v9 = vand.u32 2147483647, %v2009_v51  ;;  %v287_v60 = vor.u32 4788187, %v286_v13  ;;  %v548_v46 = vor.u32 %v547_v63, %v546_v34 }
  0xf2   :  { %v2028_v58 = vsub.s32 %v680_v15, %v683_v41  ;;  %vm549_vm10 = vcmp.lt.s32.totalorder %v530_v52, 1  ;;  %vm551_vm11 = vcmp.lt.s32.totalorder %v530_v52, 3  ;;  %vm552_vm12 = vcmp.lt.s32.totalorder %v530_v52, 4 }
  0xf3   :  { %v553_v14 = vsel %vm549_vm10, %v533_v1, %v536_v23  ;;  %v557_v29 = vsel %vm549_vm10, %v536_v23, %v539_v45  ;;  %v554_v57 = vsel %vm552_vm12, %v542_v50, 2102212464  ;;  %v558_v62 = vsel %vm552_vm12, %v545_v39, 920167782 }
  0xf4   :  { %v686_v55 = vsub.s32 0, %v2028_v58  ;;  %v561_v44 = vsel %vm549_vm10, %v539_v45, %v542_v50  ;;  %vm550_vm14 = vcmp.lt.s32.totalorder %v530_v52, 2  ;;  %v555_v47 = vsel %vm551_vm11, %v539_v45, %v554_v57 }
  0xf5   :  { %v559_v28 = vsel %vm551_vm11, %v542_v50, %v558_v62  ;;  %v562_v53 = vsel %vm552_vm12, %v548_v46, 1326507024  ;;  %v288_v49 = vand.u32 2147483647, %v287_v60  ;;  %v556_v34 = vsel %vm550_vm14, %v553_v14, %v555_v47 }
  0xf6   :  { %v1324_v13 = vmin.u32 %v686_v55, %v2028_v58  ;;  %v560_v15 = vsel %vm550_vm14, %v557_v29, %v559_v28  ;;  %v563_v48 = vsel %vm551_vm11, %v545_v39, %v562_v53  ;;  %vm837_vm15 = vcmp.gt.s32.totalorder %v836_v7, 0 }
  0xf7   :  { %v564_v41 = vsel %vm550_vm14, %v561_v44, %v563_v48  ;;  %v2033_v63 = vmul.u32.u64.low %v2005_v38, %v560_v15  ;;  %v2034_v1 = vmul.u32.u64.high %v2005_v38, %v560_v15, %v2033_v63  ;;  %1453 = vcosq.f32 %v2002_v36 }
  0xf8   :  { %v688_v23 = vclz %v1324_v13  ;;  %v2038_v26 = vmul.u32.u64.low %v2005_v38, %v564_v41  ;;  %v2039_v11 = vmul.u32.u64.high %v2005_v38, %v564_v41, %v2038_v26  ;;  %v290_v46 = vcvt.s32.f32 %v283_v19 }
  0xf9   :  { %v838_v52 = vsel %vm837_vm15, %v836_v7, 0  ;;  %v191_v29 = vsub.s32 4, %v1782_v20  ;;  %v676_v45 = vadd.s32 %v1952_v27, %v1967_v24  ;;  %v2045_v60 = vshll.u32 %v834_v59, 8 }
  0xfa   :  { %v1325_v50 = vadd.s32 4294967294, %v688_v23  ;;  %v840_v39 = vand.u32 31, %v838_v52  ;;  %v2047_v14 = vmul.f32 %v290_v46, %v288_v49  ;;  %v572_v55 = vmul.u32 %v2005_v38, %v556_v34 }
  0xfb   :  { %v575_v26 = vadd.s32 1, %v2034_v1  ;;  %v726_v57 = vand.u32 2139095040, %v2009_v51  ;;  %vm574_vm1 = vc.u32 %v2039_v11, %v2033_v63  ;;  %v2056_v27 = vand.u32 8388607, %v2413_v9 }
  0xfc   :  { %vm1326_vm0 = vcmp.lt.s32.totalorder %v1325_v50, 0  ;;  %v841_v7 = vsub.s32 32, %v840_v39  ;;  %v2059_v19 = vshrl.u32 %v838_v52, 5  ;;  %v843_v38 = vshll.u32 %v1506_v2, %v840_v39 }
  0xfd   :  { %v691_v24 = vsel %vm1326_vm0, 0, %v1325_v50  ;;  %v576_v59 = vsel %vm574_vm1, %v575_v26, %v2034_v1  ;;  %v846_v28 = vshll.u32 %v1507_v4, %v840_v39  ;;  %v849_v15 = vshll.u32 %v1508_v6, %v840_v39 }
  0xfe   :  { %v692_v62 = vsub.s32 32, %v691_v24  ;;  %v696_v44 = vsub.s32 4294967266, %v691_v24  ;;  %v577_v47 = vadd.s32 %v576_v59, %v572_v55  ;;  %v693_v53 = vshll.u32 %v2028_v58, %v691_v24 }
  0xff   :  { %v844_v49 = vshrl.u32 %v1507_v4, %v841_v7  ;;  %v847_v13 = vshrl.u32 %v1508_v6, %v841_v7  ;;  %v850_v1 = vshrl.u32 %v1509_v8, %v841_v7  ;;  %v852_v52 = vshll.u32 %v1509_v8, %v840_v39 }
 0x100   :  { %v694_v48 = vshrl.u32 %v676_v45, %v692_v62  ;;  %v697_v34 = vadd.s32 127, %v696_v44  ;;  %v578_v41 = vadd.s32 536870912, %v577_v47  ;;  %v853_v50 = vshrl.u32 %v1510_v10, %v841_v7 }
 0x101   :  { %v845_v23 = vor.u32 %v844_v49, %v843_v38  ;;  %v848_v46 = vor.u32 %v847_v13, %v846_v28  ;;  %v851_v24 = vor.u32 %v850_v1, %v849_v15  ;;  %v2072_v59 = vpop.eup %1453  ;;  %v855_v45 = vshll.u32 %v1510_v10, %v840_v39 }
 0x102   :  { %v695_v55 = vor.u32 %v694_v48, %v693_v53  ;;  %v698_v26 = vshll.u32 %v697_v34, 23  ;;  %v2070_v58 = vshrl.u32 %v578_v41, 30  ;;  %v854_v9 = vor.u32 %v853_v50, %v852_v52 }
 0x103   :  { %v856_v62 = vshrl.u32 %v1511_v18, %v841_v7  ;;  %v727_v44 = vshrl.u32 %v726_v57, 23  ;;  %vm107_vm3 = vcmp.lt.s32.totalorder %v1656_v32, 0  ;;  %vm622_vm4 = vcmp.lt.s32.totalorder %v1802_v5, 0 }
 0x104   :  { %v699_v38 = vor.u32 4788187, %v698_v26  ;;  %v580_v28 = vshll.u32 %v2070_v58, 30  ;;  %v842_v53 = vshrl.u32 %v1506_v2, %v841_v7  ;;  %vm858_vm6 = vcmp.lt.s32.totalorder %v2059_v19, 1 }
 0x105   :  { %vm210_vm8 = vcmp.lt.s32.totalorder %v1676_v56, 0  ;;  %v702_v49 = vcvt.s32.f32 %v695_v55  ;;  %v857_v13 = vor.u32 %v856_v62, %v855_v45  ;;  %vm859_vm9 = vcmp.lt.s32.totalorder %v2059_v19, 2 }
 0x106   :  { %vm861_vm10 = vcmp.lt.s32.totalorder %v2059_v19, 4  ;;  %v700_v39 = vand.u32 2147483647, %v699_v38  ;;  %v2084_v57 = vsub.s32 %v577_v47, %v580_v28  ;;  %v866_v48 = vsel %vm858_vm6, %v845_v23, %v848_v46 }
 0x107   :  { %v863_v15 = vsel %vm861_vm10, %v851_v24, 2102212464  ;;  %vm860_vm11 = vcmp.lt.s32.totalorder %v2059_v19, 3  ;;  %v867_v7 = vsel %vm861_vm10, %v854_v9, 920167782  ;;  %v870_v34 = vsel %vm858_vm6, %v848_v46, %v851_v24 }
 0x108   :  { %v871_v41 = vsel %vm861_vm10, %v857_v13, 1326507024  ;;  %v703_v1 = vmul.f32 %v702_v49, %v700_v39  ;;  %v583_v52 = vsub.s32 0, %v2084_v57  ;;  %v862_v50 = vsel %vm858_vm6, %v842_v53, %v845_v23 }
 0x109   :  { %v868_v55 = vsel %vm860_vm11, %v851_v24, %v867_v7  ;;  %vm2096_vm12 = vcmp.le.f32.partialorder %v105_v35, 0.7853982  ;;  %v864_v26 = vsel %vm860_vm11, %v848_v46, %v863_v15  ;;  %v872_v62 = vsel %vm860_vm11, %v854_v9, %v871_v41 }
 0x10a   :  { %v869_v45 = vsel %vm859_vm9, %v866_v48, %v868_v55  ;;  %v1327_v38 = vadd.s32 4294967169, %v727_v44  ;;  %v292_v28 = vxor.u32 2147483648, %v2047_v14  ;;  %v704_v49 = vxor.u32 2147483648, %v703_v1 }
 0x10b   :  { %v1320_v13 = vmin.u32 %v583_v52, %v2084_v57  ;;  %v873_v23 = vsel %vm859_vm9, %v870_v34, %v872_v62  ;;  %v2111_v53 = vmul.u32.u64.low %v2045_v60, %v869_v45  ;;  %v2112_v46 = vmul.u32.u64.high %v2045_v60, %v869_v45, %v2111_v53 }
 0x10c   :  { %v2107_v24 = vmul.u32.u64.low %v2045_v60, %v873_v23  ;;  %v2108_v35 = vmul.u32.u64.high %v2045_v60, %v873_v23, %v2107_v24  ;;  %v865_v9 = vsel %vm859_vm9, %v862_v50, %v864_v26  ;;  %v731_v44 = vor.u32 8388608, %v2056_v27 }
 0x10d   :  { %v585_v39 = vclz %v1320_v13  ;;  %v733_v15 = vadd.s32 1, %v1327_v38  ;;  %v2420_v48 = vxor.u32 2147483648, %v1974_v37  ;;  %1455 = vsinq.f32 %v2002_v36 }
 0x10e   :  { %v2421_v34 = vand.u32 2147483647, %v1802_v5  ;;  %v705_v19 = vsel %vm622_vm4, %v704_v49, %v703_v1  ;;  %v2135_v27 = vsel %vm210_vm8, %v292_v28, %v2047_v14  ;;  %v573_v36 = vadd.s32 %v2033_v63, %v2039_v11 }
 0x10f   :  { %v190_v7 = vsel %vm107_vm3, %v2420_v48, %v1974_v37  ;;  %v1321_v52 = vadd.s32 4294967294, %v585_v39  ;;  %vm734_vm15 = vcmp.gt.s32.totalorder %v733_v15, 0  ;;  %v2142_v37 = vsel %vm107_vm3, %v191_v29, %v1782_v20 }
 0x110   :  { %vm2126_vm14 = vcmp.le.f32.partialorder %v2421_v34, 0.7853982  ;;  %v881_v50 = vmul.u32 %v2045_v60, %v865_v9  ;;  %vm883_vm0 = vc.u32 %v2108_v35, %v2111_v53  ;;  %v884_v14 = vadd.s32 1, %v2112_v46 }
 0x111   :  { %v2153_v1 = vsel %vm2126_vm14, %v1802_v5, %v705_v19  ;;  %vm1322_vm1 = vcmp.lt.s32.totalorder %v1321_v52, 0  ;;  %v735_v55 = vsel %vm734_vm15, %v733_v15, 0  ;;  %v2155_v26 = vshll.u32 %v731_v44, 8 }
 0x112   :  { %v588_v20 = vsel %vm1322_vm1, 0, %v1321_v52  ;;  %v885_v29 = vsel %vm883_vm0, %v884_v14, %v2112_v46  ;;  %v737_v11 = vand.u32 31, %v735_v55  ;;  %v193_v63 = vsel %vm2096_vm12, %v1656_v32, %v190_v7 }
 0x113   :  { %v589_v60 = vsub.s32 32, %v588_v20  ;;  %v593_v45 = vsub.s32 4294967266, %v588_v20  ;;  %v886_v62 = vadd.s32 %v885_v29, %v881_v50  ;;  %v736_v38 = vshrl.u32 %v735_v55, 5 }
 0x114   :  { %v590_v28 = vshll.u32 %v2084_v57, %v588_v20  ;;  %v738_v49 = vsub.s32 32, %v737_v11  ;;  %v740_v13 = vshll.u32 %v1506_v2, %v737_v11  ;;  %v743_v23 = vshll.u32 %v1507_v4, %v737_v11 }
 0x115   :  { %v591_v24 = vshrl.u32 %v573_v36, %v589_v60  ;;  %v594_v39 = vadd.s32 127, %v593_v45  ;;  %v887_v9 = vadd.s32 536870912, %v886_v62  ;;  %v746_v46 = vshll.u32 %v1508_v6, %v737_v11 }
 0x116   :  { %v741_v44 = vshrl.u32 %v1507_v4, %v738_v49  ;;  %v744_v15 = vshrl.u32 %v1508_v6, %v738_v49  ;;  %v747_v48 = vshrl.u32 %v1509_v8, %v738_v49  ;;  %v749_v7 = vshll.u32 %v1509_v8, %v737_v11 }
 0x117   :  { %v592_v34 = vor.u32 %v591_v24, %v590_v28  ;;  %v595_v57 = vshll.u32 %v594_v39, 23  ;;  %v2169_v19 = vshrl.u32 %v887_v9, 30  ;;  %v750_v52 = vshrl.u32 %v1510_v10, %v738_v49  ;;  %v2172_v50 = vpop.eup %1455 }
 0x118   :  { %v742_v36 = vor.u32 %v741_v44, %v740_v13  ;;  %v745_v14 = vor.u32 %v744_v15, %v743_v23  ;;  %v748_v55 = vor.u32 %v747_v48, %v746_v46  ;;  %1457 = vcosq.f32 %v193_v63 }
 0x119   :  { %v596_v20 = vor.u32 4788187, %v595_v57  ;;  %v889_v4 = vshll.u32 %v2169_v19, 30  ;;  %v739_v6 = vshrl.u32 %v1506_v2, %v738_v49  ;;  %v751_v29 = vor.u32 %v750_v52, %v749_v7 }
 0x11a   :  { %v599_v60 = vcvt.s32.f32 %v592_v34  ;;  %v752_v8 = vshll.u32 %v1510_v10, %v737_v11  ;;  %v753_v45 = vshrl.u32 %v1511_v18, %v738_v49  ;;  %vm755_vm3 = vcmp.lt.s32.totalorder %v736_v38, 1 }
 0x11b   :  { %v597_v28 = vand.u32 2147483647, %v596_v20  ;;  %v2178_v24 = vsub.s32 %v886_v62, %v889_v4  ;;  %vm757_vm6 = vcmp.lt.s32.totalorder %v736_v38, 3  ;;  %vm758_vm9 = vcmp.lt.s32.totalorder %v736_v38, 4 }
 0x11c   :  { %v754_v13 = vor.u32 %v753_v45, %v752_v8  ;;  %v760_v23 = vsel %vm758_vm9, %v748_v55, 2102212464  ;;  %v763_v39 = vsel %vm755_vm3, %v742_v36, %v745_v14  ;;  %v764_v9 = vsel %vm758_vm9, %v751_v29, 920167782 }
 0x11d   :  { %v600_v46 = vmul.f32 %v599_v60, %v597_v28  ;;  %v892_v2 = vsub.s32 0, %v2178_v24  ;;  %vm756_vm10 = vcmp.lt.s32.totalorder %v736_v38, 2  ;;  %v765_v44 = vsel %vm757_vm6, %v748_v55, %v764_v9 }
 0x11e   :  { %v2424_v10 = vand.u32 2147483647, %v1887_v16  ;;  %v759_v11 = vsel %vm755_vm3, %v739_v6, %v742_v36  ;;  %v766_v62 = vsel %vm756_vm10, %v763_v39, %v765_v44  ;;  %v767_v49 = vsel %vm755_vm3, %v745_v14, %v748_v55 }
 0x11f   :  { %v768_v15 = vsel %vm758_vm9, %v754_v13, 1326507024  ;;  %v601_v48 = vxor.u32 2147483648, %v600_v46  ;;  %v1332_v7 = vmin.u32 %v892_v2, %v2178_v24  ;;  %v761_v34 = vsel %vm757_vm6, %v745_v14, %v760_v23 }
 0x120   :  { %vm2185_vm11 = vcmp.le.f32.partialorder %v2424_v10, 0.7853982  ;;  %v769_v57 = vsel %vm757_vm6, %v751_v29, %v768_v15  ;;  %v2197_v20 = vmul.u32.u64.low %v2155_v26, %v766_v62  ;;  %v2198_v4 = vmul.u32.u64.high %v2155_v26, %v766_v62, %v2197_v20 }
 0x121   :  { %v770_v52 = vsel %vm756_vm10, %v767_v49, %v769_v57  ;;  %1459 = vsinq.f32 %v193_v63  ;;  %v894_v36 = vclz %v1332_v7  ;;  %v194_v55 = vsel %vm2096_vm12, 0, %v2142_v37 }
 0x122   :  { %v2201_v6 = vmul.u32.u64.low %v2155_v26, %v770_v52  ;;  %v2202_v60 = vmul.u32.u64.high %v2155_v26, %v770_v52, %v2201_v6  ;;  %v2207_v8 = vpop.eup %1457  ;;  %1461 = vcosq.f32 %v2153_v1  ;;  %vm519_vm15 = vcmp.lt.s32.totalorder %v1887_v16, 0 }
 0x123   :  { %v762_v14 = vsel %vm756_vm10, %v759_v11, %v761_v34  ;;  %v2427_v29 = vand.u32 2147483647, %v1676_v56  ;;  %1463 = vsinq.f32 %v2153_v1  ;;  %v882_v47 = vadd.s32 %v2111_v53, %v2108_v35 }
 0x124   :  { %v1333_v37 = vadd.s32 4294967294, %v894_v36  ;;  %v294_v45 = vsub.s32 4, %v1899_v0  ;;  %v602_v28 = vsel %vm519_vm15, %v601_v48, %v600_v46  ;;  %v781_v38 = vadd.s32 1, %v2198_v4 }
 0x125   :  { %vm2214_vm0 = vcmp.le.f32.partialorder %v2427_v29, 0.7853982  ;;  %v2225_v13 = vand.u32 3, %v194_v55  ;;  %v778_v1 = vmul.u32 %v2155_v26, %v762_v14  ;;  %vm780_vm1 = vc.u32 %v2202_v60, %v2197_v20 }
 0x126   :  { %v296_v23 = vsel %vm2214_vm0, %v1676_v56, %v2135_v27  ;;  %vm1334_vm12 = vcmp.lt.s32.totalorder %v1333_v37, 0  ;;  %v295_v35 = vsel %vm210_vm8, %v294_v45, %v1899_v0  ;;  %v782_v39 = vsel %vm780_vm1, %v781_v38, %v2198_v4 }
 0x127   :  { %v897_v53 = vsel %vm1334_vm12, 0, %v1333_v37  ;;  %v297_v9 = vsel %vm2214_vm0, 0, %v295_v35  ;;  %1465 = vcosq.f32 %v296_v23  ;;  %v605_v27 = vsel %vm2185_vm11, %v1887_v16, %v602_v28 }
 0x128   :  { %v898_v46 = vsub.s32 32, %v897_v53  ;;  %v902_v2 = vsub.s32 4294967266, %v897_v53  ;;  %v783_v26 = vadd.s32 %v782_v39, %v778_v1  ;;  %v899_v44 = vshll.u32 %v2178_v24, %v897_v53 }
 0x129   :  { %1467 = vsinq.f32 %v296_v23  ;;  %v2243_v10 = vand.u32 3, %v297_v9  ;;  %v397_v49 = vsub.s32 4, %v1754_v42  ;;  %vm199_vm8 = vcmp.lt.s32.totalorder %v2225_v13, 2 }
 0x12a   :  { %v900_v0 = vshrl.u32 %v882_v47, %v898_v46  ;;  %v903_v11 = vadd.s32 127, %v902_v2  ;;  %v784_v62 = vadd.s32 536870912, %v783_v26  ;;  %1469 = vcosq.f32 %v605_v27 }
 0x12b   :  { %v1460_v15 = vpop.eup %1459  ;;  %vm200_vm3 = vcmp.eq.s32.totalorder %v2225_v13, 0  ;;  %v204_v48 = vxor.u32 2147483648, %v2207_v8  ;;  %1471 = vsinq.f32 %v605_v27  ;;  %v2254_v4 = vadd.s32 %v2197_v20, %v2202_v60 }
 0x12c   :  { %v901_v7 = vor.u32 %v900_v0, %v899_v44  ;;  %v904_v34 = vshll.u32 %v903_v11, 23  ;;  %v2249_v57 = vshrl.u32 %v784_v62, 30  ;;  %v201_v24 = vxor.u32 2147483648, %v1460_v15  ;;  %v2251_v52 = vpop.eup %1461 }
 0x12d   :  { %vm203_vm6 = vcmp.eq.s32.totalorder %v2225_v13, 2  ;;  %v398_v36 = vsel %vm313_vm7, %v397_v49, %v1754_v42  ;;  %v2260_v6 = vpop.eup %1463  ;;  %vm197_vm9 = vweird.f32 %v1656_v32  ;;  %vm302_vm10 = vcmp.lt.s32.totalorder %v2243_v10, 2 }
 0x12e   :  { %v905_v55 = vor.u32 4788187, %v904_v34  ;;  %v786_v14 = vshll.u32 %v2249_v57, 30  ;;  %vm303_vm0 = vcmp.eq.s32.totalorder %v2243_v10, 0  ;;  %v908_v29 = vcvt.s32.f32 %v901_v7 }
 0x12f   :  { %v205_v20 = vsel %vm203_vm6, %v204_v48, %v1460_v15  ;;  %vm300_vm12 = vweird.f32 %v1676_v56  ;;  %v400_v60 = vsel %vm1863_vm13, 0, %v398_v36  ;;  %v500_v42 = vsub.s32 4, %v1820_v30 }
 0x130   :  { %vm828_vm7 = vcmp.lt.s32.totalorder %v1894_v25, 0  ;;  %v906_v63 = vand.u32 2147483647, %v905_v55  ;;  %v2271_v47 = vsub.s32 %v783_v26, %v786_v14  ;;  %v202_v37 = vsel %vm200_vm3, %v2207_v8, %v201_v24 }
 0x131   :  { %v404_v45 = vand.u32 3, %v400_v60  ;;  %v1466_v28 = vpop.eup %1465  ;;  %vm306_vm1 = vcmp.eq.s32.totalorder %v2243_v10, 2  ;;  %v407_v38 = vxor.u32 2147483648, %v2013_v33  ;;  %v410_v54 = vxor.u32 2147483648, %v1932_v22 }
 0x132   :  { %v501_v23 = vsel %vm416_vm2, %v500_v42, %v1820_v30  ;;  %v909_v1 = vmul.f32 %v908_v29, %v906_v63  ;;  %v789_v35 = vsub.s32 0, %v2271_v47  ;;  %v307_v53 = vxor.u32 2147483648, %v1466_v28 }
 0x133   :  { %vm403_vm13 = vweird.f32 %v1653_v31  ;;  %v1468_v39 = vpop.eup %1467  ;;  %v206_v8 = vsel %vm199_vm8, %v202_v37, %v205_v20  ;;  %vm406_vm3 = vcmp.eq.s32.totalorder %v404_v45, 0  ;;  %v503_v9 = vsel %vm1978_vm5, 0, %v501_v23 }
 0x134   :  { %v510_v27 = vxor.u32 2147483648, %v2172_v50  ;;  %v1328_v46 = vmin.u32 %v789_v35, %v2271_v47  ;;  %v304_v2 = vxor.u32 2147483648, %v1468_v39  ;;  %v308_v30 = vsel %vm306_vm1, %v307_v53, %v1468_v39  ;;  %v1470_v26 = vpop.eup %1469 }
 0x135   :  { %vm409_vm2 = vcmp.eq.s32.totalorder %v404_v45, 2  ;;  %v2430_v44 = vand.u32 2147483647, %v1894_v25  ;;  %v910_v13 = vxor.u32 2147483648, %v909_v1  ;;  %v408_v11 = vsel %vm406_vm3, %v1932_v22, %v407_v38  ;;  %v1472_v34 = vpop.eup %1471 }
 0x136   :  { %v411_v3 = vsel %vm409_vm2, %v410_v54, %v2013_v33  ;;  %v507_v62 = vand.u32 3, %v503_v9  ;;  %v791_v49 = vclz %v1328_v46  ;;  %v305_v15 = vsel %vm303_vm0, %v1466_v28, %v304_v2 }
 0x137   :  { %vm2292_vm6 = vcmp.le.f32.partialorder %v2430_v44, 0.7853982  ;;  %v513_v48 = vxor.u32 2147483648, %v2072_v59  ;;  %v603_v7 = vsub.s32 4, %v2070_v58  ;;  %v207_v24 = vsel %vm197_vm9, nan, %v206_v8 }
 0x138   :  { %v309_v36 = vsel %vm302_vm10, %v305_v15, %v308_v30  ;;  %vm405_vm5 = vcmp.lt.s32.totalorder %v404_v45, 2  ;;  %vm506_vm8 = vweird.f32 %v1665_v40  ;;  %v1329_v22 = vadd.s32 4294967294, %v791_v49 }
 0x139   :  { %v310_v33 = vsel %vm300_vm12, nan, %v309_v36  ;;  %v412_v55 = vsel %vm405_vm5, %v408_v11, %v411_v3  ;;  %vm509_vm0 = vcmp.eq.s32.totalorder %v507_v62, 0  ;;  %v911_v14 = vsel %vm828_vm7, %v910_v13, %v909_v1 }
 0x13a   :  { %v933_v29 = vpack.c.bf16 %v310_v33, %v207_v24  ;;  %v511_v20 = vsel %vm509_vm0, %v2072_v59, %v510_v27  ;;  %vm512_vm1 = vcmp.eq.s32.totalorder %v507_v62, 2  ;;  %vm1330_vm9 = vcmp.lt.s32.totalorder %v1329_v22, 0 }
 0x13b   :  { %vm508_vm3 = vcmp.lt.s32.totalorder %v507_v62, 2  ;;  %v514_v32 = vsel %vm512_vm1, %v513_v48, %v2172_v50  ;;  %v604_v10 = vsel %vm519_vm15, %v603_v7, %v2070_v58  ;;  %v794_v60 = vsel %vm1330_vm9, 0, %v1329_v22 }
 0x13c   :  { %1364 = vmatprep.subr.bf16.mxu0 %v933_v29  ;;  %v413_v56 = vsel %vm403_vm13, nan, %v412_v55  ;;  %v515_v42 = vsel %vm508_vm3, %v511_v20, %v514_v32  ;;  %v606_v63 = vsel %vm2185_vm11, 0, %v604_v10  ;;  %v795_v37 = vsub.s32 32, %v794_v60 }
 0x13d   :  { %v799_v59 = vsub.s32 4294967266, %v794_v60  ;;  %1365 = vmatpush3.bf16.msra.mxu0 %v933_v29  ;;  %v516_v45 = vsel %vm506_vm8, nan, %v515_v42  ;;  %v613_v50 = vxor.u32 2147483648, %v1472_v34  ;;  %v610_v38 = vand.u32 3, %v606_v63 }
 0x13e   :  { %v934_v28 = vpack.c.bf16 %v516_v45, %v413_v56  ;;  %v616_v54 = vxor.u32 2147483648, %v1470_v26  ;;  %v706_v58 = vsub.s32 4, %v2015_v12  ;;  %v914_v31 = vsel %vm2292_vm6, %v1894_v25, %v911_v14 }
 0x13f   :  { %v796_v23 = vshll.u32 %v2271_v47, %v794_v60  ;;  %v797_v18 = vshrl.u32 %v2254_v4, %v795_v37  ;;  %v800_v1 = vadd.s32 127, %v799_v59  ;;  %vm611_vm11 = vcmp.lt.s32.totalorder %v610_v38, 2 }
 0x140   :  { %1366 = vmatprep.subr.bf16.mxu0 %v934_v28  ;;  %vm612_vm15 = vcmp.eq.s32.totalorder %v610_v38, 0  ;;  %vm615_vm10 = vcmp.eq.s32.totalorder %v610_v38, 2  ;;  %v707_v40 = vsel %vm622_vm4, %v706_v58, %v2015_v12  ;;  %v716_v4 = vxor.u32 2147483648, %v2260_v6  ;;  %v1446_v38 = vld [vmem:[%s2400_s3 + $0x8] sm:$0xff]  }
 0x141   :  { %v798_v35 = vor.u32 %v797_v18, %v796_v23  ;;  %v801_v53 = vshll.u32 %v800_v1, 23  ;;  %1367 = vmatpush3.bf16.msra.mxu0 %v934_v28  ;;  %v614_v39 = vsel %vm612_vm15, %v1470_v26, %v613_v50  ;;  %v617_v8 = vsel %vm615_vm10, %v616_v54, %v1472_v34  ;;  %v944_v54 = vpop.permute.xlu0 %943 }
 0x142   :  { %v618_v9 = vsel %vm611_vm11, %v614_v39, %v617_v8  ;;  %v709_v47 = vsel %vm2126_vm14, 0, %v707_v40  ;;  %v719_v27 = vxor.u32 2147483648, %v2251_v52  ;;  %1473 = vcosq.f32 %v914_v31 }
 0x143   :  { %v802_v46 = vor.u32 4788187, %v801_v53  ;;  %v713_v2 = vand.u32 3, %v709_v47  ;;  %1475 = vsinq.f32 %v914_v31  ;;  %v805_v30 = vcvt.s32.f32 %v798_v35 }
 0x144   :  { %vm609_vm4 = vweird.f32 %v1887_v16  ;;  %v912_v13 = vsub.s32 4, %v2169_v19  ;;  %vm712_vm14 = vweird.f32 %v1802_v5  ;;  %v1445_v16 = vld [vmem:[%s2400_s3] sm:$0xff]   ;;  %vm725_vm5 = vcmp.lt.s32.totalorder %v2009_v51, 0 }
 0x145   :  { %v803_v12 = vand.u32 2147483647, %v802_v46  ;;  %v619_v44 = vsel %vm609_vm4, nan, %v618_v9  ;;  %vm715_vm12 = vcmp.eq.s32.totalorder %v713_v2, 0  ;;  %vm718_vm13 = vcmp.eq.s32.totalorder %v713_v2, 2  ;;  %v1040_v58 = vpop.permute.xlu0 %1039 }
 0x146   :  { %vm714_vm2 = vcmp.lt.s32.totalorder %v713_v2, 2  ;;  %v717_v26 = vsel %vm715_vm12, %v2251_v52, %v716_v4  ;;  %v720_v41 = vsel %vm718_vm13, %v719_v27, %v2260_v6  ;;  %v913_v52 = vsel %vm828_vm7, %v912_v13, %v2169_v19 }
 0x147   :  { %v806_v11 = vmul.f32 %v805_v30, %v803_v12  ;;  %v721_v3 = vsel %vm714_vm2, %v717_v26, %v720_v41  ;;  %v2433_v6 = vand.u32 2147483647, %v2009_v51  ;;  %v809_v7 = vsub.s32 4, %v2249_v57 }
 0x148   :  { %v722_v62 = vsel %vm712_vm14, nan, %v721_v3  ;;  %vm971_vm0 = vcmask 523264   ;;  %v915_v19 = vsel %vm2292_vm6, 0, %v913_v52  ;;  %vm918_vm11 = vweird.f32 %v1894_v25  ;;  %v1447_v25 = vld [vmem:[%s2404_s7] sm:$0xff]  }
 0x149   :  { %v807_v49 = vxor.u32 2147483648, %v806_v11  ;;  %v935_v15 = vpack.c.bf16 %v722_v62, %v619_v44  ;;  %vm2349_vm8 = vcmp.le.f32.partialorder %v2433_v6, 0.7853982  ;;  %1372 = vmatprep.mubr.msk.bf16.mxu0 %vm971_vm0, %v1445_v16  ;;  %v810_v22 = vsel %vm725_vm5, %v809_v7, %v2249_v57  ;;  %v954_v23 = vpop.permute.xlu0 %953 }
 0x14a   :  { %v919_v33 = vand.u32 3, %v915_v19  ;;  %v812_v29 = vsel %vm2349_vm8, 0, %v810_v22  ;;  %vm815_vm10 = vweird.f32 %v2009_v51  ;;  %vm1171_vm4 = vcmask 261120  }
 0x14b   :  { %v808_v5 = vsel %vm725_vm5, %v807_v49, %v806_v11  ;;  %1368 = vmatprep.subr.bf16.mxu0 %v935_v15  ;;  %v816_v20 = vand.u32 3, %v812_v29  ;;  %1386 = vmatprep.mubr.msk.bf16.mxu1 %vm1171_vm4, %v1447_v25  ;;  %v1113_v9 = vadd.f32 %v1922_v17, %v1040_v58  ;;  %v1448_v17 = vld [vmem:[%s2404_s7 + $0x8] sm:$0xff]   ;;  %vm1513_vm12 = vmmov 0  }
 0x14c   :  { %v811_v34 = vsel %vm2349_vm8, %v2009_v51, %v808_v5  ;;  %1369 = vmatpush3.bf16.msra.mxu0 %v935_v15  ;;  %v1474_v24 = vpop.eup %1473  ;;  %vm921_vm7 = vcmp.eq.s32.totalorder %v919_v33, 0  ;;  %vm924_vm1 = vcmp.eq.s32.totalorder %v919_v33, 2  ;;  %vm920_vm9 = vcmp.lt.s32.totalorder %v919_v33, 2  ;;  %v949_v51 = vpop.permute.xlu1 %948 }
 0x14d   :  { %1477 = vcosq.f32 %v811_v34  ;;  %v1476_v36 = vpop.eup %1475  ;;  %v925_v14 = vxor.u32 2147483648, %v1474_v24  ;;  %vm821_vm6 = vcmp.eq.s32.totalorder %v816_v20, 2  ;;  %vm818_vm3 = vcmp.eq.s32.totalorder %v816_v20, 0  ;;  %v1050_v1 = vpop.permute.xlu0 %1049 }
 0x14e   :  { %1479 = vsinq.f32 %v811_v34  ;;  %v922_v55 = vxor.u32 2147483648, %v1476_v36  ;;  %vm817_vm15 = vcmp.lt.s32.totalorder %v816_v20, 2  ;;  %v1121_v35 = vadd.f32 %v1917_v61, %v1050_v1 }
 0x14f   :  { %v926_v10 = vsel %vm924_vm1, %v925_v14, %v1476_v36  ;;  %v1231_v14 = vld [vmem:[%s2406_s9] sm:$0x1]  ;;  %v1240_v29 = vlaneseq }
 0x150   :  { %v923_v32 = vsel %vm921_vm7, %v1474_v24, %v922_v55  ;;  %v1045_v31 = vpop.permute.xlu1 %1044 }
 0x151   :  { %v927_v42 = vsel %vm920_vm9, %v923_v32, %v926_v10  ;;  %v1116_v12 = vadd.f32 %v1939_v43, %v1045_v31  ;;  %v1144_v43 = vpop.permute.xlu0 %1143  ;;  %v1241_v20 = vshrl.u32 %v1240_v29, 7 }
 0x152   :  { %v928_v59 = vsel %vm918_vm11, nan, %v927_v42 }
 0x153   :  { %v1242_v32 = vsub.s32 0, %v1241_v20 }
 0x154   :  { %v959_v18 = vpop.permute.xlu1 %958 }
 0x155   :  { %v1154_v62 = vpop.permute.xlu0 %1153 }
 0x157   :  { %v1478_v60 = vpop.eup %1477 }
 0x158   :  { %v1480_v56 = vpop.eup %1479  ;;  %v822_v0 = vxor.u32 2147483648, %v1478_v60  ;;  %v1055_v8 = vpop.permute.xlu1 %1054 }
 0x159   :  { %v819_v63 = vxor.u32 2147483648, %v1480_v56  ;;  %v1124_v27 = vadd.f32 %v1930_v21, %v1055_v8  ;;  %v1512_v21 = vmov 0.0   ;;  %v1238_v10 = vpop.permute.xlu0 %1237 }
 0x15a   :  { %v823_v57 = vsel %vm821_vm6, %v822_v0, %v1480_v56 }
 0x15b   :  { %v820_v37 = vsel %vm818_vm3, %v1478_v60, %v819_v63  ;;  %v1243_v60 = vrot.slane %v1238_v10, %v1242_v32 }
 0x15c   :  { %v824_v45 = vsel %vm817_vm15, %v820_v37, %v823_v57  ;;  %v1149_v3 = vpop.permute.xlu1 %1148 }
 0x15d   :  { %v825_v50 = vsel %vm815_vm10, nan, %v824_v45 }
 0x15e   :  { %v936_v28 = vpack.c.bf16 %v928_v59, %v825_v50 }
 0x160   :  { %1370 = vmatprep.subr.bf16.mxu0 %v936_v28  ;;  %v1159_v52 = vpop.permute.xlu1 %1158 }
 0x161   :  { %1371 = vmatpush3.bf16.msra.mxu0 %v936_v28 }
 0x164   :  { %1373 = vmatmul.mubr.msk.bf16.vlgmr.msra.gmra.mrb[0].mxu0 %vm971_vm0, %v1446_v38 }
 0x237   :  { %v1374_v40 = vpop.f32.mrb[0].mxu0 }
 0x238   :  { %v1021_v53 = vadd.f32 %v1374_v40, %v954_v23  ;;  %v1012_v39 = vpop.f32.mrb[1].mxu0 }
 0x239   :  { %v1013_v47 = vadd.f32 %v1012_v39, %v944_v54  ;;  %v1375_v4 = vpop.f32.mrb[2].mxu0 }
 0x23a   :  { %v1129_v46 = vmul.f32 %v1121_v35, %v1021_v53  ;;  %v1024_v2 = vadd.f32 %v1375_v4, %v959_v18  ;;  %v1015_v30 = vpop.f32.mrb[3].mxu0 }
 0x23b   :  { %v1127_v44 = vmul.f32 %v1113_v9, %v1013_v47  ;;  %v1016_v26 = vadd.f32 %v1015_v30, %v949_v51 }
 0x23c   :  { %v1130_v41 = vmul.f32 %v1124_v27, %v1024_v2 }
 0x23d   :  { %v1128_v13 = vmul.f32 %v1116_v12, %v1016_v26 }
 0x23e   :  { %v1136_v11 = vpack.c.bf16 %v1130_v41, %v1129_v46 }
 0x23f   :  { %v1135_v61 = vpack.c.bf16 %v1128_v13, %v1127_v44 }
 0x241   :  { %1382 = vmatprep.subr.bf16.mxu1 %v1135_v61 }
 0x242   :  { %1383 = vmatpush3.bf16.msra.mxu1 %v1135_v61 }
 0x243   :  { %1384 = vmatprep.subr.bf16.mxu1 %v1136_v11 }
 0x246   :  { %1385 = vmatpush3.bf16.msra.mxu1 %v1136_v11 }
 0x247   :  { %1390 = vmatprep.subr.bf16.mxu1 %v1512_v21 }
 0x249   :  { %1387 = vmatmul.mubr.msk.bf16.vlgmr.msra.gmra.mrb[4].mxu1 %vm1171_vm4, %v1448_v17 }
 0x24a   :  { %1394 = vmatprep.mubr.msk.bf16.mxu1 %vm1513_vm12, %v1512_v21 }
 0x31c   :  { %v1388_v16 = vpop.f32.mrb[4].mxu1 }
 0x31d   :  { %v1221_v49 = vadd.f32 %v1388_v16, %v1154_v62  ;;  %v1212_v15 = vpop.f32.mrb[5].mxu1 }
 0x31e   :  { %v1213_v6 = vadd.f32 %v1212_v15, %v1144_v43  ;;  %v1389_v48 = vpop.f32.mrb[6].mxu1 }
 0x31f   :  { %v1224_v5 = vadd.f32 %v1389_v48, %v1159_v52  ;;  %v1215_v7 = vpop.f32.mrb[7].mxu1  ;;  %v1229_v24 = vmax.f32 %v1221_v49, 0.0 }
 0x320   :  { %v1216_v34 = vadd.f32 %v1215_v7, %v1149_v3  ;;  %v1227_v36 = vmax.f32 %v1213_v6, 0.0 }
 0x321   :  { %v1230_v19 = vmax.f32 %v1224_v5, 0.0 }
 0x322   :  { %v1228_v22 = vmax.f32 %v1216_v34, 0.0 }
 0x323   :  { %v1233_v33 = vpack.c.bf16 %v1230_v19, %v1229_v24 }
 0x324   :  { %v1232_v55 = vpack.c.bf16 %v1228_v22, %v1227_v36 }
 0x326   :  { %1391 = vmatpush3.bf16.msra.mxu1 %v1232_v55 }
 0x327   :  { %1392 = vmatprep.subr.bf16.mxu1 %v1512_v21 }
 0x32a   :  { %1393 = vmatpush3.bf16.msra.mxu1 %v1233_v33 }
 0x32d   :  { %1395 = vmatmul.mubr.msk.bf16.vlgmr.msra.gmra.mrb[8].mxu1 %vm1171_vm4, %v1231_v14 }
 0x400   :  { %v1281_v56 = vpop.f32.mrb[8].mxu1 }
 0x401   :  { %v1282_v0 = vadd.f32 %v1281_v56, %v1243_v60  ;;  %v1396_v42 = vpop.f32.mrb[9].mxu1 }
 0x402   :  { %v1284_v63 = vpop.f32.mrb[10].mxu1 }
 0x403   :  { %1287 = vst [vmem:[#allocation3] sm:$0x1] %v1282_v0  ;;  %v1397_v57 = vpop.f32.mrb[11].mxu1 }
 0x404   :  { %1492 = shalt.err (!%p1489_p4)
}
 0x405   :  { %s1493_s28 = scalar_lea.hbm %s2408_s11, 16 }
 0x406   :  { %p1494_p5 = scmp.ne.s32.totalorder %s2408_s11, %s1493_s28  ;;  %p1497_p6 = scmp.lt.u32.totalorder %s1493_s28, %s2408_s11 }
 0x408   :  { %p1499_p7 = pnand %p1497_p6, %p1494_p5 }
 0x40a   :  { %1502 = shalt.err (!%p1499_p7)
}
 0x40b   :  { %1297 = dma.vmem_to_hbm [thread:$0]  %s1295_s10, 16, %s2408_s11, [#allocation4]  }
 0x40c   :  { %1503 = dma.done.wait [#allocation4], 16  }
 0x40d   :  { %1504 = vsyncadd [#allocation4], 4294967280 }
 0x40e   :  { %1301 = vsyncpa [#allocation4], 1 }

</bundles_post_ra>
